<compile_context>
chip_gen: v5e
topology: v5e:2x2
jax: 0.10.0
libtpu: 0.0.40
codegen_flags: <defaults>
</compile_context>

<pallas_src>
import functools

import numpy as np
import jax
import jax.numpy as jnp
from jax.experimental import pallas as pl
from jax.experimental.pallas import tpu as pltpu


# --------------------------------------------------------------------------
# Fully fused STA forward kernel: per grid step b, processes all T graphs of
# one batch element (STA GAT layers + geo branch + output head).
# TODO(synk): STAblock body was not given; implemented as a dense single-head
# GAT layer (x@W, additive attention, adjacency mask, softmax, aggregate,
# ReLU projection).
# TODO(synk): GeoSpatialBranch(2, 32, 8, 3) body was not given; the
# kernel-size-3 temporal conv is omitted, only a distance-softmax spatial
# aggregation + 2-layer MLP is modeled.
# --------------------------------------------------------------------------
def _sta_fused_kernel(x_ref, adj_ref, s_ref,
                      w_ref, asrc_ref, adst_ref, wo_ref, bo_ref,
                      gw1_ref, gb1_ref, gw2_ref, gb2_ref,
                      hwo_ref, hbo_ref, hw1_ref, hb1_ref,
                      o_ref, *, alpha):
    _, T, V, F_in = x_ref.shape
    L = w_ref.shape[0]
    TV = T * V

    x3 = x_ref[0]                               # (T, V, F_in)
    x_flat = x3.reshape(TV, F_in)               # (T*V, F_in) batched over graphs

    # ---- STA blocks: all layers, weights resident in VMEM -----------------
    layer_outs = []
    for l in range(L):
        h = jnp.dot(x_flat, w_ref[l], preferred_element_type=jnp.float32)   # (TV, H)
        e_src = jnp.sum(h * asrc_ref[l], axis=-1, keepdims=True)            # (TV, 1)
        e_dst = jnp.sum(h * adst_ref[l], axis=-1, keepdims=True)            # (TV, 1)
        agg_parts = []
        for t in range(T):                      # static unroll: per-graph attention
            r0 = t * V
            es = e_src[r0:r0 + V, :]            # (V, 1)
            ed = e_dst[r0:r0 + V, :]            # (V, 1)
            e = es + ed.T                       # (V, V)
            e = jnp.where(e > 0.0, e, alpha * e)          # LeakyReLU(alpha)
            a_t = adj_ref[0, t]                 # (V, V)
            # NOTE: isolated nodes (no edges at all) would get a uniform row
            # here; the demo adjacency always contains self-loops.
            e = jnp.where(a_t > 0.0, e, -1e9)
            e = e - jnp.max(e, axis=-1, keepdims=True)
            p = jnp.exp(e)
            att = p * pl.reciprocal(jnp.sum(p, axis=-1, keepdims=True), approx=True)
            h_t = h[r0:r0 + V, :]               # (V, H)
            agg_parts.append(jnp.dot(att, h_t, preferred_element_type=jnp.float32))
        agg = jnp.concatenate(agg_parts, axis=0)                            # (TV, H)
        out_l = jnp.maximum(
            jnp.dot(agg, wo_ref[l], preferred_element_type=jnp.float32) + bo_ref[l],
            0.0)                                                            # (TV, D)
        layer_outs.append(out_l)

    # ---- Geo branch: spatial softmax weights precomputed in the wrapper ---
    s = s_ref[...]                              # (V, V)
    geo_parts = []
    for t in range(T):
        x2_t = x3[t, :, 0:2]                    # (V, 2)
        geo_parts.append(jnp.dot(s, x2_t, preferred_element_type=jnp.float32))
    geo_agg = jnp.concatenate(geo_parts, axis=0)                            # (TV, 2)
    gh = jnp.maximum(
        jnp.dot(geo_agg, gw1_ref[...], preferred_element_type=jnp.float32) + gb1_ref[...],
        0.0)                                                                # (TV, 32)
    geo_out = (jnp.dot(gh, gw2_ref[...], preferred_element_type=jnp.float32)
               + gb2_ref[...])                                              # (TV, d_geo)

    # ---- Lane-dense concat; linear_1 weight rows were permuted in the
    # wrapper so this matches the original stack(dim=-1).reshape interleave --
    final = jnp.concatenate(layer_outs + [geo_out], axis=-1)                # (TV, F_total)

    # ---- Head: linear_o over the n_graph axis (scalars from SMEM), squeeze,
    # then linear_1 ----------------------------------------------------------
    z = final[0:V, :] * hwo_ref[0, 0]
    for t in range(1, T):
        z = z + final[t * V:(t + 1) * V, :] * hwo_ref[0, t]
    z = z + hbo_ref[0, 0]                                                   # (V, F_total)
    out = jnp.dot(z, hw1_ref[...], preferred_element_type=jnp.float32) + hb1_ref[...]
    o_ref[0] = out                                                          # (V, 2)


# --------------------------------------------------------------------------
# Top-level STA forward (mirrors the PyTorch STA.forward structure)
# --------------------------------------------------------------------------
@functools.partial(jax.jit, static_argnums=(0, 1, 2), static_argnames=("alpha",))
def sta_forward(batch_size, n_graph, n_vertex, node_features, node_edges,
                distance_matrix, params, *, alpha):
    # drop the last time step: all_node_feature[:, :-1], all_node_edges[:, :-1]
    x = node_features[:, :-1, :, :]                 # (B, n_graph, V, F_in)
    adj = node_edges[:, :-1, :, :]                  # (B, n_graph, V, V)
    dis = jnp.asarray(distance_matrix, jnp.float32)
    s = jax.nn.softmax(-dis, axis=-1)               # hoisted geo spatial softmax

    blocks = params["sta_blocks"]
    L = len(blocks)
    w_all = jnp.stack([p["w"] for p in blocks])         # (L, F_in, H)
    asrc_all = jnp.stack([p["a_src"] for p in blocks])   # (L, 1, H)
    adst_all = jnp.stack([p["a_dst"] for p in blocks])   # (L, 1, H)
    wo_all = jnp.stack([p["wo"] for p in blocks])         # (L, H, D)
    bo_all = jnp.stack([p["bo"] for p in blocks])          # (L, 1, D)
    D = wo_all.shape[-1]

    gp = params["geo"]
    hp = params["head"]

    # permute linear_1 rows so the kernel's [layer0 | layer1 | ... | geo] lane
    # concat is numerically identical to the original interleaved
    # torch.stack(dim=-1).reshape(...) feature order.
    w1 = hp["w_1"]                                   # (F_total, 2)
    w1_sta = w1[:D * L].reshape(D, L, w1.shape[1]).transpose(1, 0, 2).reshape(L * D, w1.shape[1])
    w1_eff = jnp.concatenate([w1_sta, w1[D * L:]], axis=0)

    B, T, V, F_in = x.shape
    H = w_all.shape[-1]
    GH = gp["w1"].shape[1]
    DG = gp["w2"].shape[1]
    F_total = w1_eff.shape[0]

    out = pl.pallas_call(
        functools.partial(_sta_fused_kernel, alpha=alpha),
        out_shape=jax.ShapeDtypeStruct((B, V, 2), jnp.float32),
        grid=(B,),
        in_specs=[
            pl.BlockSpec((1, T, V, F_in), lambda b: (b, 0, 0, 0)),   # x
            pl.BlockSpec((1, T, V, V), lambda b: (b, 0, 0, 0)),      # adj
            pl.BlockSpec((V, V), lambda b: (0, 0)),                  # softmax(-dis)
            pl.BlockSpec((L, F_in, H), lambda b: (0, 0, 0)),         # W per layer
            pl.BlockSpec((L, 1, H), lambda b: (0, 0, 0)),            # a_src
            pl.BlockSpec((L, 1, H), lambda b: (0, 0, 0)),            # a_dst
            pl.BlockSpec((L, H, D), lambda b: (0, 0, 0)),            # W_out
            pl.BlockSpec((L, 1, D), lambda b: (0, 0, 0)),            # b_out
            pl.BlockSpec((2, GH), lambda b: (0, 0)),                 # geo w1
            pl.BlockSpec((1, GH), lambda b: (0, 0)),                 # geo b1
            pl.BlockSpec((GH, DG), lambda b: (0, 0)),                # geo w2
            pl.BlockSpec((1, DG), lambda b: (0, 0)),                 # geo b2
            pl.BlockSpec(memory_space=pltpu.MemorySpace.SMEM),       # linear_o w (1, G)
            pl.BlockSpec(memory_space=pltpu.MemorySpace.SMEM),       # linear_o b (1, 1)
            pl.BlockSpec((F_total, 2), lambda b: (0, 0)),            # linear_1 w (permuted)
            pl.BlockSpec((1, 2), lambda b: (0, 0)),                  # linear_1 b
        ],
        out_specs=pl.BlockSpec((1, V, 2), lambda b: (b, 0, 0)),
        compiler_params=pltpu.CompilerParams(dimension_semantics=("parallel",)),
    )(x, adj, s, w_all, asrc_all, adst_all, wo_all, bo_all,
      gp["w1"], gp["b1"], gp["w2"], gp["b2"],
      hp["w_o"], hp["b_o"], w1_eff, hp["b_1"])
    return out


def init_params(key, *, inputsize, gat_hidden, d_sta, gnn_hidden, d_geo,
                n_graph, f_total, n_layers):
    def dense(k, shape, scale=0.1):
        return (scale * jax.random.normal(k, shape)).astype(jnp.float32)

    keys = iter(jax.random.split(key, 8 * n_layers + 16))
    sta_blocks = []
    for _ in range(n_layers):
        sta_blocks.append({
            "w": dense(next(keys), (inputsize, gat_hidden)),
            "a_src": dense(next(keys), (1, gat_hidden)),
            "a_dst": dense(next(keys), (1, gat_hidden)),
            "wo": dense(next(keys), (gat_hidden, d_sta)),
            "bo": dense(next(keys), (1, d_sta)),
        })
    geo = {
        "w1": dense(next(keys), (2, gnn_hidden)),
        "b1": dense(next(keys), (1, gnn_hidden)),
        "w2": dense(next(keys), (gnn_hidden, d_geo)),
        "b2": dense(next(keys), (1, d_geo)),
    }
    hd = {
        "w_o": dense(next(keys), (1, n_graph)),       # nn.Linear(n_graph, 1)
        "b_o": dense(next(keys), (1, 1)),
        "w_1": dense(next(keys), (f_total, 2)),       # nn.Linear(20*n_layers, 2)
        "b_1": dense(next(keys), (1, 2)),
    }
    return {"sta_blocks": sta_blocks, "geo": geo, "head": hd}


if __name__ == "__main__":
    batch_size = 2
    n_graph = 4            # time steps used (input sequences have n_graph + 1 graphs)
    n_vertex = 16
    inputsize = 4
    gat_hidden = 8
    gat_heads = 1          # TODO(synk): single attention head only
    alpha = 0.2
    gnn_hidden = 32
    n_layers = 2
    d_sta = 16
    d_geo = 8
    f_total = 20 * n_layers
    assert d_sta * n_layers + d_geo == f_total

    key = jax.random.PRNGKey(0)
    k_feat, k_adj, k_par = jax.random.split(key, 3)

    # synthetic "input_graphs": node features + dense adjacency per (batch, time).
    # (the edge_index -> dense adjacency scatter of the original code is glue.)
    all_node_feature = jax.random.normal(
        k_feat, (batch_size, n_graph + 1, n_vertex, inputsize), jnp.float32)
    a = jax.random.bernoulli(
        k_adj, 0.3, (batch_size, n_graph + 1, n_vertex, n_vertex)).astype(jnp.float32)
    all_node_edges = jnp.clip(
        a + jnp.transpose(a, (0, 1, 3, 2)) + jnp.eye(n_vertex, dtype=jnp.float32),
        0.0, 1.0)

    # distance matrix built in numpy (mirrors torch.from_numpy(distance_matrix))
    rng = np.random.default_rng(0)
    pos = rng.standard_normal((n_vertex, 2)).astype(np.float32)
    distance_matrix = np.sqrt(
        ((pos[:, None, :] - pos[None, :, :]) ** 2).sum(-1)).astype(np.float32)

    params = init_params(
        k_par, inputsize=inputsize, gat_hidden=gat_hidden, d_sta=d_sta,
        gnn_hidden=gnn_hidden, d_geo=d_geo, n_graph=n_graph,
        f_total=f_total, n_layers=n_layers)

    out = sta_forward(batch_size, n_graph, n_vertex, all_node_feature,
                      all_node_edges, distance_matrix, params, alpha=alpha)
    out = jax.block_until_ready(out)
    assert out.shape == (batch_size, n_vertex, 2), out.shape
    assert bool(jnp.all(jnp.isfinite(out)))
    print("KERNEL_OK")
</pallas_src>

<mosaic_0001>
module attributes {stable_mosaic.version = 11 : i64} {
  func.func @_sta_fused_kernel(%arg0: i32, %arg1: memref<1x4x16x4xf32, #tpu.memory_space<vmem>>, %arg2: memref<1x4x16x16xf32, #tpu.memory_space<vmem>>, %arg3: memref<16x16xf32, #tpu.memory_space<vmem>>, %arg4: memref<2x4x8xf32, #tpu.memory_space<vmem>>, %arg5: memref<2x1x8xf32, #tpu.memory_space<vmem>>, %arg6: memref<2x1x8xf32, #tpu.memory_space<vmem>>, %arg7: memref<2x8x16xf32, #tpu.memory_space<vmem>>, %arg8: memref<2x1x16xf32, #tpu.memory_space<vmem>>, %arg9: memref<2x32xf32, #tpu.memory_space<vmem>>, %arg10: memref<1x32xf32, #tpu.memory_space<vmem>>, %arg11: memref<32x8xf32, #tpu.memory_space<vmem>>, %arg12: memref<1x8xf32, #tpu.memory_space<vmem>>, %arg13: memref<1x4xf32, #tpu.memory_space<smem>>, %arg14: memref<1x1xf32, #tpu.memory_space<smem>>, %arg15: memref<40x2xf32, #tpu.memory_space<vmem>>, %arg16: memref<1x2xf32, #tpu.memory_space<vmem>>, %arg17: memref<1x16x2xf32, #tpu.memory_space<vmem>>) attributes {dimension_semantics = [#tpu.dimension_semantics<parallel>], iteration_bounds = array<i64: 2>, scalar_prefetch = 0 : i64, scratch_operands = 0 : i64, tpu.core_type = #tpu.core_type<tc>, window_params = [{transform_indices = @transform_0, window_bounds = array<i64: 1, 4, 16, 4>}, {transform_indices = @transform_1, window_bounds = array<i64: 1, 4, 16, 16>}, {pipeline_mode = #tpu.pipeline_mode<synchronous>, transform_indices = @transform_2, window_bounds = array<i64: 16, 16>}, {pipeline_mode = #tpu.pipeline_mode<synchronous>, transform_indices = @transform_3, window_bounds = array<i64: 2, 4, 8>}, {pipeline_mode = #tpu.pipeline_mode<synchronous>, transform_indices = @transform_4, window_bounds = array<i64: 2, 1, 8>}, {pipeline_mode = #tpu.pipeline_mode<synchronous>, transform_indices = @transform_5, window_bounds = array<i64: 2, 1, 8>}, {pipeline_mode = #tpu.pipeline_mode<synchronous>, transform_indices = @transform_6, window_bounds = array<i64: 2, 8, 16>}, {pipeline_mode = #tpu.pipeline_mode<synchronous>, transform_indices = @transform_7, window_bounds = array<i64: 2, 1, 16>}, {pipeline_mode = #tpu.pipeline_mode<synchronous>, transform_indices = @transform_8, window_bounds = array<i64: 2, 32>}, {pipeline_mode = #tpu.pipeline_mode<synchronous>, transform_indices = @transform_9, window_bounds = array<i64: 1, 32>}, {pipeline_mode = #tpu.pipeline_mode<synchronous>, transform_indices = @transform_10, window_bounds = array<i64: 32, 8>}, {pipeline_mode = #tpu.pipeline_mode<synchronous>, transform_indices = @transform_11, window_bounds = array<i64: 1, 8>}, {transform_indices = @transform_12, window_bounds = array<i64: 1, 4>}, {transform_indices = @transform_13, window_bounds = array<i64: 1, 1>}, {pipeline_mode = #tpu.pipeline_mode<synchronous>, transform_indices = @transform_14, window_bounds = array<i64: 40, 2>}, {pipeline_mode = #tpu.pipeline_mode<synchronous>, transform_indices = @transform_15, window_bounds = array<i64: 1, 2>}, {transform_indices = @transform_16, window_bounds = array<i64: 1, 16, 2>}]} {
    %c0 = arith.constant 0 : index
    %c0_0 = arith.constant 0 : index
    %c0_1 = arith.constant 0 : index
    %c0_2 = arith.constant 0 : index
    %0 = vector.load %arg1[%c0, %c0_0, %c0_1, %c0_2] : memref<1x4x16x4xf32, #tpu.memory_space<vmem>>, vector<1x4x16x4xf32>
    %1 = vector.shape_cast %0 : vector<1x4x16x4xf32> to vector<4x16x4xf32>
    %2 = vector.shape_cast %1 : vector<4x16x4xf32> to vector<64x4xf32>
    %c0_3 = arith.constant 0 : index
    %c0_4 = arith.constant 0 : index
    %c0_5 = arith.constant 0 : index
    %3 = vector.load %arg4[%c0_3, %c0_4, %c0_5] : memref<2x4x8xf32, #tpu.memory_space<vmem>>, vector<1x4x8xf32>
    %4 = vector.shape_cast %3 : vector<1x4x8xf32> to vector<4x8xf32>
    %cst = arith.constant dense<0.000000e+00> : vector<64x8xf32>
    %5 = tpu.matmul %2, %4, %cst {dimension_numbers = #tpu.dot_dimension_numbers<[1], [0], [0], [1], [0, 0, 1, 1], [], []>} : vector<64x4xf32>, vector<4x8xf32>, vector<64x8xf32> -> vector<64x8xf32>
    %c0_6 = arith.constant 0 : index
    %c0_7 = arith.constant 0 : index
    %c0_8 = arith.constant 0 : index
    %6 = vector.load %arg5[%c0_6, %c0_7, %c0_8] : memref<2x1x8xf32, #tpu.memory_space<vmem>>, vector<1x1x8xf32>
    %7 = vector.shape_cast %6 : vector<1x1x8xf32> to vector<1x8xf32>
    %8 = vector.broadcast %7 : vector<1x8xf32> to vector<64x8xf32>
    %9 = arith.mulf %5, %8 : vector<64x8xf32>
    %cst_9 = arith.constant dense<0.000000e+00> : vector<64xf32>
    %10 = vector.multi_reduction <add>, %9, %cst_9 [1] : vector<64x8xf32> to vector<64xf32>
    %11 = vector.shape_cast %10 : vector<64xf32> to vector<64x1xf32>
    %c0_10 = arith.constant 0 : index
    %c0_11 = arith.constant 0 : index
    %c0_12 = arith.constant 0 : index
    %12 = vector.load %arg6[%c0_10, %c0_11, %c0_12] : memref<2x1x8xf32, #tpu.memory_space<vmem>>, vector<1x1x8xf32>
    %13 = vector.shape_cast %12 : vector<1x1x8xf32> to vector<1x8xf32>
    %14 = vector.broadcast %13 : vector<1x8xf32> to vector<64x8xf32>
    %15 = arith.mulf %5, %14 : vector<64x8xf32>
    %cst_13 = arith.constant dense<0.000000e+00> : vector<64xf32>
    %16 = vector.multi_reduction <add>, %15, %cst_13 [1] : vector<64x8xf32> to vector<64xf32>
    %17 = vector.shape_cast %16 : vector<64xf32> to vector<64x1xf32>
    %18 = vector.extract_strided_slice %11 {offsets = [0, 0], sizes = [16, 1], strides = [1, 1]} : vector<64x1xf32> to vector<16x1xf32>
    %19 = vector.extract_strided_slice %17 {offsets = [0, 0], sizes = [16, 1], strides = [1, 1]} : vector<64x1xf32> to vector<16x1xf32>
    %20 = tpu.transpose %19, [1, 0] : vector<16x1xf32> -> vector<1x16xf32>
    %21 = vector.broadcast %18 : vector<16x1xf32> to vector<16x16xf32>
    %22 = vector.broadcast %20 : vector<1x16xf32> to vector<16x16xf32>
    %23 = arith.addf %21, %22 : vector<16x16xf32>
    %cst_14 = arith.constant 0.000000e+00 : f32
    %24 = vector.broadcast %cst_14 : f32 to vector<16x16xf32>
    %25 = arith.cmpf ogt, %23, %24 : vector<16x16xf32>
    %cst_15 = arith.constant 2.000000e-01 : f32
    %26 = vector.broadcast %cst_15 : f32 to vector<16x16xf32>
    %27 = arith.mulf %26, %23 : vector<16x16xf32>
    %28 = arith.select %25, %23, %27 : vector<16x16xi1>, vector<16x16xf32>
    %c0_16 = arith.constant 0 : index
    %c0_17 = arith.constant 0 : index
    %c0_18 = arith.constant 0 : index
    %c0_19 = arith.constant 0 : index
    %29 = vector.load %arg2[%c0_16, %c0_17, %c0_18, %c0_19] : memref<1x4x16x16xf32, #tpu.memory_space<vmem>>, vector<1x1x16x16xf32>
    %30 = vector.shape_cast %29 : vector<1x1x16x16xf32> to vector<16x16xf32>
    %cst_20 = arith.constant 0.000000e+00 : f32
    %31 = vector.broadcast %cst_20 : f32 to vector<16x16xf32>
    %32 = arith.cmpf ogt, %30, %31 : vector<16x16xf32>
    %cst_21 = arith.constant -1.000000e+09 : f32
    %33 = vector.broadcast %cst_21 : f32 to vector<16x16xf32>
    %34 = arith.select %32, %28, %33 : vector<16x16xi1>, vector<16x16xf32>
    %cst_22 = arith.constant dense<0xFF800000> : vector<16xf32>
    %35 = vector.multi_reduction <maximumf>, %34, %cst_22 [1] : vector<16x16xf32> to vector<16xf32>
    %36 = vector.shape_cast %35 : vector<16xf32> to vector<16x1xf32>
    %37 = vector.broadcast %36 : vector<16x1xf32> to vector<16x16xf32>
    %38 = arith.subf %34, %37 : vector<16x16xf32>
    %39 = math.exp %38 : vector<16x16xf32>
    %cst_23 = arith.constant dense<0.000000e+00> : vector<16xf32>
    %40 = vector.multi_reduction <add>, %39, %cst_23 [1] : vector<16x16xf32> to vector<16xf32>
    %41 = vector.shape_cast %40 : vector<16xf32> to vector<16x1xf32>
    %42 = tpu.reciprocal %41 {approx = true} : vector<16x1xf32> -> vector<16x1xf32>
    %43 = vector.broadcast %42 : vector<16x1xf32> to vector<16x16xf32>
    %44 = arith.mulf %39, %43 : vector<16x16xf32>
    %45 = vector.extract_strided_slice %5 {offsets = [0, 0], sizes = [16, 8], strides = [1, 1]} : vector<64x8xf32> to vector<16x8xf32>
    %cst_24 = arith.constant dense<0.000000e+00> : vector<16x8xf32>
    %46 = tpu.matmul %44, %45, %cst_24 {dimension_numbers = #tpu.dot_dimension_numbers<[1], [0], [0], [1], [0, 0, 1, 1], [], []>} : vector<16x16xf32>, vector<16x8xf32>, vector<16x8xf32> -> vector<16x8xf32>
    %47 = vector.extract_strided_slice %11 {offsets = [16, 0], sizes = [16, 1], strides = [1, 1]} : vector<64x1xf32> to vector<16x1xf32>
    %48 = vector.extract_strided_slice %17 {offsets = [16, 0], sizes = [16, 1], strides = [1, 1]} : vector<64x1xf32> to vector<16x1xf32>
    %49 = tpu.transpose %48, [1, 0] : vector<16x1xf32> -> vector<1x16xf32>
    %50 = vector.broadcast %47 : vector<16x1xf32> to vector<16x16xf32>
    %51 = vector.broadcast %49 : vector<1x16xf32> to vector<16x16xf32>
    %52 = arith.addf %50, %51 : vector<16x16xf32>
    %cst_25 = arith.constant 0.000000e+00 : f32
    %53 = vector.broadcast %cst_25 : f32 to vector<16x16xf32>
    %54 = arith.cmpf ogt, %52, %53 : vector<16x16xf32>
    %cst_26 = arith.constant 2.000000e-01 : f32
    %55 = vector.broadcast %cst_26 : f32 to vector<16x16xf32>
    %56 = arith.mulf %55, %52 : vector<16x16xf32>
    %57 = arith.select %54, %52, %56 : vector<16x16xi1>, vector<16x16xf32>
    %c0_27 = arith.constant 0 : index
    %c1 = arith.constant 1 : index
    %c0_28 = arith.constant 0 : index
    %c0_29 = arith.constant 0 : index
    %58 = vector.load %arg2[%c0_27, %c1, %c0_28, %c0_29] : memref<1x4x16x16xf32, #tpu.memory_space<vmem>>, vector<1x1x16x16xf32>
    %59 = vector.shape_cast %58 : vector<1x1x16x16xf32> to vector<16x16xf32>
    %cst_30 = arith.constant 0.000000e+00 : f32
    %60 = vector.broadcast %cst_30 : f32 to vector<16x16xf32>
    %61 = arith.cmpf ogt, %59, %60 : vector<16x16xf32>
    %cst_31 = arith.constant -1.000000e+09 : f32
    %62 = vector.broadcast %cst_31 : f32 to vector<16x16xf32>
    %63 = arith.select %61, %57, %62 : vector<16x16xi1>, vector<16x16xf32>
    %cst_32 = arith.constant dense<0xFF800000> : vector<16xf32>
    %64 = vector.multi_reduction <maximumf>, %63, %cst_32 [1] : vector<16x16xf32> to vector<16xf32>
    %65 = vector.shape_cast %64 : vector<16xf32> to vector<16x1xf32>
    %66 = vector.broadcast %65 : vector<16x1xf32> to vector<16x16xf32>
    %67 = arith.subf %63, %66 : vector<16x16xf32>
    %68 = math.exp %67 : vector<16x16xf32>
    %cst_33 = arith.constant dense<0.000000e+00> : vector<16xf32>
    %69 = vector.multi_reduction <add>, %68, %cst_33 [1] : vector<16x16xf32> to vector<16xf32>
    %70 = vector.shape_cast %69 : vector<16xf32> to vector<16x1xf32>
    %71 = tpu.reciprocal %70 {approx = true} : vector<16x1xf32> -> vector<16x1xf32>
    %72 = vector.broadcast %71 : vector<16x1xf32> to vector<16x16xf32>
    %73 = arith.mulf %68, %72 : vector<16x16xf32>
    %74 = vector.extract_strided_slice %5 {offsets = [16, 0], sizes = [16, 8], strides = [1, 1]} : vector<64x8xf32> to vector<16x8xf32>
    %cst_34 = arith.constant dense<0.000000e+00> : vector<16x8xf32>
    %75 = tpu.matmul %73, %74, %cst_34 {dimension_numbers = #tpu.dot_dimension_numbers<[1], [0], [0], [1], [0, 0, 1, 1], [], []>} : vector<16x16xf32>, vector<16x8xf32>, vector<16x8xf32> -> vector<16x8xf32>
    %76 = vector.extract_strided_slice %11 {offsets = [32, 0], sizes = [16, 1], strides = [1, 1]} : vector<64x1xf32> to vector<16x1xf32>
    %77 = vector.extract_strided_slice %17 {offsets = [32, 0], sizes = [16, 1], strides = [1, 1]} : vector<64x1xf32> to vector<16x1xf32>
    %78 = tpu.transpose %77, [1, 0] : vector<16x1xf32> -> vector<1x16xf32>
    %79 = vector.broadcast %76 : vector<16x1xf32> to vector<16x16xf32>
    %80 = vector.broadcast %78 : vector<1x16xf32> to vector<16x16xf32>
    %81 = arith.addf %79, %80 : vector<16x16xf32>
    %cst_35 = arith.constant 0.000000e+00 : f32
    %82 = vector.broadcast %cst_35 : f32 to vector<16x16xf32>
    %83 = arith.cmpf ogt, %81, %82 : vector<16x16xf32>
    %cst_36 = arith.constant 2.000000e-01 : f32
    %84 = vector.broadcast %cst_36 : f32 to vector<16x16xf32>
    %85 = arith.mulf %84, %81 : vector<16x16xf32>
    %86 = arith.select %83, %81, %85 : vector<16x16xi1>, vector<16x16xf32>
    %c0_37 = arith.constant 0 : index
    %c2 = arith.constant 2 : index
    %c0_38 = arith.constant 0 : index
    %c0_39 = arith.constant 0 : index
    %87 = vector.load %arg2[%c0_37, %c2, %c0_38, %c0_39] : memref<1x4x16x16xf32, #tpu.memory_space<vmem>>, vector<1x1x16x16xf32>
    %88 = vector.shape_cast %87 : vector<1x1x16x16xf32> to vector<16x16xf32>
    %cst_40 = arith.constant 0.000000e+00 : f32
    %89 = vector.broadcast %cst_40 : f32 to vector<16x16xf32>
    %90 = arith.cmpf ogt, %88, %89 : vector<16x16xf32>
    %cst_41 = arith.constant -1.000000e+09 : f32
    %91 = vector.broadcast %cst_41 : f32 to vector<16x16xf32>
    %92 = arith.select %90, %86, %91 : vector<16x16xi1>, vector<16x16xf32>
    %cst_42 = arith.constant dense<0xFF800000> : vector<16xf32>
    %93 = vector.multi_reduction <maximumf>, %92, %cst_42 [1] : vector<16x16xf32> to vector<16xf32>
    %94 = vector.shape_cast %93 : vector<16xf32> to vector<16x1xf32>
    %95 = vector.broadcast %94 : vector<16x1xf32> to vector<16x16xf32>
    %96 = arith.subf %92, %95 : vector<16x16xf32>
    %97 = math.exp %96 : vector<16x16xf32>
    %cst_43 = arith.constant dense<0.000000e+00> : vector<16xf32>
    %98 = vector.multi_reduction <add>, %97, %cst_43 [1] : vector<16x16xf32> to vector<16xf32>
    %99 = vector.shape_cast %98 : vector<16xf32> to vector<16x1xf32>
    %100 = tpu.reciprocal %99 {approx = true} : vector<16x1xf32> -> vector<16x1xf32>
    %101 = vector.broadcast %100 : vector<16x1xf32> to vector<16x16xf32>
    %102 = arith.mulf %97, %101 : vector<16x16xf32>
    %103 = vector.extract_strided_slice %5 {offsets = [32, 0], sizes = [16, 8], strides = [1, 1]} : vector<64x8xf32> to vector<16x8xf32>
    %cst_44 = arith.constant dense<0.000000e+00> : vector<16x8xf32>
    %104 = tpu.matmul %102, %103, %cst_44 {dimension_numbers = #tpu.dot_dimension_numbers<[1], [0], [0], [1], [0, 0, 1, 1], [], []>} : vector<16x16xf32>, vector<16x8xf32>, vector<16x8xf32> -> vector<16x8xf32>
    %105 = vector.extract_strided_slice %11 {offsets = [48, 0], sizes = [16, 1], strides = [1, 1]} : vector<64x1xf32> to vector<16x1xf32>
    %106 = vector.extract_strided_slice %17 {offsets = [48, 0], sizes = [16, 1], strides = [1, 1]} : vector<64x1xf32> to vector<16x1xf32>
    %107 = tpu.transpose %106, [1, 0] : vector<16x1xf32> -> vector<1x16xf32>
    %108 = vector.broadcast %105 : vector<16x1xf32> to vector<16x16xf32>
    %109 = vector.broadcast %107 : vector<1x16xf32> to vector<16x16xf32>
    %110 = arith.addf %108, %109 : vector<16x16xf32>
    %cst_45 = arith.constant 0.000000e+00 : f32
    %111 = vector.broadcast %cst_45 : f32 to vector<16x16xf32>
    %112 = arith.cmpf ogt, %110, %111 : vector<16x16xf32>
    %cst_46 = arith.constant 2.000000e-01 : f32
    %113 = vector.broadcast %cst_46 : f32 to vector<16x16xf32>
    %114 = arith.mulf %113, %110 : vector<16x16xf32>
    %115 = arith.select %112, %110, %114 : vector<16x16xi1>, vector<16x16xf32>
    %c0_47 = arith.constant 0 : index
    %c3 = arith.constant 3 : index
    %c0_48 = arith.constant 0 : index
    %c0_49 = arith.constant 0 : index
    %116 = vector.load %arg2[%c0_47, %c3, %c0_48, %c0_49] : memref<1x4x16x16xf32, #tpu.memory_space<vmem>>, vector<1x1x16x16xf32>
    %117 = vector.shape_cast %116 : vector<1x1x16x16xf32> to vector<16x16xf32>
    %cst_50 = arith.constant 0.000000e+00 : f32
    %118 = vector.broadcast %cst_50 : f32 to vector<16x16xf32>
    %119 = arith.cmpf ogt, %117, %118 : vector<16x16xf32>
    %cst_51 = arith.constant -1.000000e+09 : f32
    %120 = vector.broadcast %cst_51 : f32 to vector<16x16xf32>
    %121 = arith.select %119, %115, %120 : vector<16x16xi1>, vector<16x16xf32>
    %cst_52 = arith.constant dense<0xFF800000> : vector<16xf32>
    %122 = vector.multi_reduction <maximumf>, %121, %cst_52 [1] : vector<16x16xf32> to vector<16xf32>
    %123 = vector.shape_cast %122 : vector<16xf32> to vector<16x1xf32>
    %124 = vector.broadcast %123 : vector<16x1xf32> to vector<16x16xf32>
    %125 = arith.subf %121, %124 : vector<16x16xf32>
    %126 = math.exp %125 : vector<16x16xf32>
    %cst_53 = arith.constant dense<0.000000e+00> : vector<16xf32>
    %127 = vector.multi_reduction <add>, %126, %cst_53 [1] : vector<16x16xf32> to vector<16xf32>
    %128 = vector.shape_cast %127 : vector<16xf32> to vector<16x1xf32>
    %129 = tpu.reciprocal %128 {approx = true} : vector<16x1xf32> -> vector<16x1xf32>
    %130 = vector.broadcast %129 : vector<16x1xf32> to vector<16x16xf32>
    %131 = arith.mulf %126, %130 : vector<16x16xf32>
    %132 = vector.extract_strided_slice %5 {offsets = [48, 0], sizes = [16, 8], strides = [1, 1]} : vector<64x8xf32> to vector<16x8xf32>
    %cst_54 = arith.constant dense<0.000000e+00> : vector<16x8xf32>
    %133 = tpu.matmul %131, %132, %cst_54 {dimension_numbers = #tpu.dot_dimension_numbers<[1], [0], [0], [1], [0, 0, 1, 1], [], []>} : vector<16x16xf32>, vector<16x8xf32>, vector<16x8xf32> -> vector<16x8xf32>
    %134 = tpu.concatenate %46, %75, %104, %133 in 0 : vector<16x8xf32>, vector<16x8xf32>, vector<16x8xf32>, vector<16x8xf32> -> vector<64x8xf32>
    %c0_55 = arith.constant 0 : index
    %c0_56 = arith.constant 0 : index
    %c0_57 = arith.constant 0 : index
    %135 = vector.load %arg7[%c0_55, %c0_56, %c0_57] : memref<2x8x16xf32, #tpu.memory_space<vmem>>, vector<1x8x16xf32>
    %136 = vector.shape_cast %135 : vector<1x8x16xf32> to vector<8x16xf32>
    %cst_58 = arith.constant dense<0.000000e+00> : vector<64x16xf32>
    %137 = tpu.matmul %134, %136, %cst_58 {dimension_numbers = #tpu.dot_dimension_numbers<[1], [0], [0], [1], [0, 0, 1, 1], [], []>} : vector<64x8xf32>, vector<8x16xf32>, vector<64x16xf32> -> vector<64x16xf32>
    %c0_59 = arith.constant 0 : index
    %c0_60 = arith.constant 0 : index
    %c0_61 = arith.constant 0 : index
    %138 = vector.load %arg8[%c0_59, %c0_60, %c0_61] : memref<2x1x16xf32, #tpu.memory_space<vmem>>, vector<1x1x16xf32>
    %139 = vector.shape_cast %138 : vector<1x1x16xf32> to vector<1x16xf32>
    %140 = vector.broadcast %139 : vector<1x16xf32> to vector<64x16xf32>
    %141 = arith.addf %137, %140 : vector<64x16xf32>
    %cst_62 = arith.constant 0.000000e+00 : f32
    %142 = vector.broadcast %cst_62 : f32 to vector<64x16xf32>
    %143 = arith.maximumf %141, %142 : vector<64x16xf32>
    %c1_63 = arith.constant 1 : index
    %c0_64 = arith.constant 0 : index
    %c0_65 = arith.constant 0 : index
    %144 = vector.load %arg4[%c1_63, %c0_64, %c0_65] : memref<2x4x8xf32, #tpu.memory_space<vmem>>, vector<1x4x8xf32>
    %145 = vector.shape_cast %144 : vector<1x4x8xf32> to vector<4x8xf32>
    %cst_66 = arith.constant dense<0.000000e+00> : vector<64x8xf32>
    %146 = tpu.matmul %2, %145, %cst_66 {dimension_numbers = #tpu.dot_dimension_numbers<[1], [0], [0], [1], [0, 0, 1, 1], [], []>} : vector<64x4xf32>, vector<4x8xf32>, vector<64x8xf32> -> vector<64x8xf32>
    %c1_67 = arith.constant 1 : index
    %c0_68 = arith.constant 0 : index
    %c0_69 = arith.constant 0 : index
    %147 = vector.load %arg5[%c1_67, %c0_68, %c0_69] : memref<2x1x8xf32, #tpu.memory_space<vmem>>, vector<1x1x8xf32>
    %148 = vector.shape_cast %147 : vector<1x1x8xf32> to vector<1x8xf32>
    %149 = vector.broadcast %148 : vector<1x8xf32> to vector<64x8xf32>
    %150 = arith.mulf %146, %149 : vector<64x8xf32>
    %cst_70 = arith.constant dense<0.000000e+00> : vector<64xf32>
    %151 = vector.multi_reduction <add>, %150, %cst_70 [1] : vector<64x8xf32> to vector<64xf32>
    %152 = vector.shape_cast %151 : vector<64xf32> to vector<64x1xf32>
    %c1_71 = arith.constant 1 : index
    %c0_72 = arith.constant 0 : index
    %c0_73 = arith.constant 0 : index
    %153 = vector.load %arg6[%c1_71, %c0_72, %c0_73] : memref<2x1x8xf32, #tpu.memory_space<vmem>>, vector<1x1x8xf32>
    %154 = vector.shape_cast %153 : vector<1x1x8xf32> to vector<1x8xf32>
    %155 = vector.broadcast %154 : vector<1x8xf32> to vector<64x8xf32>
    %156 = arith.mulf %146, %155 : vector<64x8xf32>
    %cst_74 = arith.constant dense<0.000000e+00> : vector<64xf32>
    %157 = vector.multi_reduction <add>, %156, %cst_74 [1] : vector<64x8xf32> to vector<64xf32>
    %158 = vector.shape_cast %157 : vector<64xf32> to vector<64x1xf32>
    %159 = vector.extract_strided_slice %152 {offsets = [0, 0], sizes = [16, 1], strides = [1, 1]} : vector<64x1xf32> to vector<16x1xf32>
    %160 = vector.extract_strided_slice %158 {offsets = [0, 0], sizes = [16, 1], strides = [1, 1]} : vector<64x1xf32> to vector<16x1xf32>
    %161 = tpu.transpose %160, [1, 0] : vector<16x1xf32> -> vector<1x16xf32>
    %162 = vector.broadcast %159 : vector<16x1xf32> to vector<16x16xf32>
    %163 = vector.broadcast %161 : vector<1x16xf32> to vector<16x16xf32>
    %164 = arith.addf %162, %163 : vector<16x16xf32>
    %cst_75 = arith.constant 0.000000e+00 : f32
    %165 = vector.broadcast %cst_75 : f32 to vector<16x16xf32>
    %166 = arith.cmpf ogt, %164, %165 : vector<16x16xf32>
    %cst_76 = arith.constant 2.000000e-01 : f32
    %167 = vector.broadcast %cst_76 : f32 to vector<16x16xf32>
    %168 = arith.mulf %167, %164 : vector<16x16xf32>
    %169 = arith.select %166, %164, %168 : vector<16x16xi1>, vector<16x16xf32>
    %c0_77 = arith.constant 0 : index
    %c0_78 = arith.constant 0 : index
    %c0_79 = arith.constant 0 : index
    %c0_80 = arith.constant 0 : index
    %170 = vector.load %arg2[%c0_77, %c0_78, %c0_79, %c0_80] : memref<1x4x16x16xf32, #tpu.memory_space<vmem>>, vector<1x1x16x16xf32>
    %171 = vector.shape_cast %170 : vector<1x1x16x16xf32> to vector<16x16xf32>
    %cst_81 = arith.constant 0.000000e+00 : f32
    %172 = vector.broadcast %cst_81 : f32 to vector<16x16xf32>
    %173 = arith.cmpf ogt, %171, %172 : vector<16x16xf32>
    %cst_82 = arith.constant -1.000000e+09 : f32
    %174 = vector.broadcast %cst_82 : f32 to vector<16x16xf32>
    %175 = arith.select %173, %169, %174 : vector<16x16xi1>, vector<16x16xf32>
    %cst_83 = arith.constant dense<0xFF800000> : vector<16xf32>
    %176 = vector.multi_reduction <maximumf>, %175, %cst_83 [1] : vector<16x16xf32> to vector<16xf32>
    %177 = vector.shape_cast %176 : vector<16xf32> to vector<16x1xf32>
    %178 = vector.broadcast %177 : vector<16x1xf32> to vector<16x16xf32>
    %179 = arith.subf %175, %178 : vector<16x16xf32>
    %180 = math.exp %179 : vector<16x16xf32>
    %cst_84 = arith.constant dense<0.000000e+00> : vector<16xf32>
    %181 = vector.multi_reduction <add>, %180, %cst_84 [1] : vector<16x16xf32> to vector<16xf32>
    %182 = vector.shape_cast %181 : vector<16xf32> to vector<16x1xf32>
    %183 = tpu.reciprocal %182 {approx = true} : vector<16x1xf32> -> vector<16x1xf32>
    %184 = vector.broadcast %183 : vector<16x1xf32> to vector<16x16xf32>
    %185 = arith.mulf %180, %184 : vector<16x16xf32>
    %186 = vector.extract_strided_slice %146 {offsets = [0, 0], sizes = [16, 8], strides = [1, 1]} : vector<64x8xf32> to vector<16x8xf32>
    %cst_85 = arith.constant dense<0.000000e+00> : vector<16x8xf32>
    %187 = tpu.matmul %185, %186, %cst_85 {dimension_numbers = #tpu.dot_dimension_numbers<[1], [0], [0], [1], [0, 0, 1, 1], [], []>} : vector<16x16xf32>, vector<16x8xf32>, vector<16x8xf32> -> vector<16x8xf32>
    %188 = vector.extract_strided_slice %152 {offsets = [16, 0], sizes = [16, 1], strides = [1, 1]} : vector<64x1xf32> to vector<16x1xf32>
    %189 = vector.extract_strided_slice %158 {offsets = [16, 0], sizes = [16, 1], strides = [1, 1]} : vector<64x1xf32> to vector<16x1xf32>
    %190 = tpu.transpose %189, [1, 0] : vector<16x1xf32> -> vector<1x16xf32>
    %191 = vector.broadcast %188 : vector<16x1xf32> to vector<16x16xf32>
    %192 = vector.broadcast %190 : vector<1x16xf32> to vector<16x16xf32>
    %193 = arith.addf %191, %192 : vector<16x16xf32>
    %cst_86 = arith.constant 0.000000e+00 : f32
    %194 = vector.broadcast %cst_86 : f32 to vector<16x16xf32>
    %195 = arith.cmpf ogt, %193, %194 : vector<16x16xf32>
    %cst_87 = arith.constant 2.000000e-01 : f32
    %196 = vector.broadcast %cst_87 : f32 to vector<16x16xf32>
    %197 = arith.mulf %196, %193 : vector<16x16xf32>
    %198 = arith.select %195, %193, %197 : vector<16x16xi1>, vector<16x16xf32>
    %c0_88 = arith.constant 0 : index
    %c1_89 = arith.constant 1 : index
    %c0_90 = arith.constant 0 : index
    %c0_91 = arith.constant 0 : index
    %199 = vector.load %arg2[%c0_88, %c1_89, %c0_90, %c0_91] : memref<1x4x16x16xf32, #tpu.memory_space<vmem>>, vector<1x1x16x16xf32>
    %200 = vector.shape_cast %199 : vector<1x1x16x16xf32> to vector<16x16xf32>
    %cst_92 = arith.constant 0.000000e+00 : f32
    %201 = vector.broadcast %cst_92 : f32 to vector<16x16xf32>
    %202 = arith.cmpf ogt, %200, %201 : vector<16x16xf32>
    %cst_93 = arith.constant -1.000000e+09 : f32
    %203 = vector.broadcast %cst_93 : f32 to vector<16x16xf32>
    %204 = arith.select %202, %198, %203 : vector<16x16xi1>, vector<16x16xf32>
    %cst_94 = arith.constant dense<0xFF800000> : vector<16xf32>
    %205 = vector.multi_reduction <maximumf>, %204, %cst_94 [1] : vector<16x16xf32> to vector<16xf32>
    %206 = vector.shape_cast %205 : vector<16xf32> to vector<16x1xf32>
    %207 = vector.broadcast %206 : vector<16x1xf32> to vector<16x16xf32>
    %208 = arith.subf %204, %207 : vector<16x16xf32>
    %209 = math.exp %208 : vector<16x16xf32>
    %cst_95 = arith.constant dense<0.000000e+00> : vector<16xf32>
    %210 = vector.multi_reduction <add>, %209, %cst_95 [1] : vector<16x16xf32> to vector<16xf32>
    %211 = vector.shape_cast %210 : vector<16xf32> to vector<16x1xf32>
    %212 = tpu.reciprocal %211 {approx = true} : vector<16x1xf32> -> vector<16x1xf32>
    %213 = vector.broadcast %212 : vector<16x1xf32> to vector<16x16xf32>
    %214 = arith.mulf %209, %213 : vector<16x16xf32>
    %215 = vector.extract_strided_slice %146 {offsets = [16, 0], sizes = [16, 8], strides = [1, 1]} : vector<64x8xf32> to vector<16x8xf32>
    %cst_96 = arith.constant dense<0.000000e+00> : vector<16x8xf32>
    %216 = tpu.matmul %214, %215, %cst_96 {dimension_numbers = #tpu.dot_dimension_numbers<[1], [0], [0], [1], [0, 0, 1, 1], [], []>} : vector<16x16xf32>, vector<16x8xf32>, vector<16x8xf32> -> vector<16x8xf32>
    %217 = vector.extract_strided_slice %152 {offsets = [32, 0], sizes = [16, 1], strides = [1, 1]} : vector<64x1xf32> to vector<16x1xf32>
    %218 = vector.extract_strided_slice %158 {offsets = [32, 0], sizes = [16, 1], strides = [1, 1]} : vector<64x1xf32> to vector<16x1xf32>
    %219 = tpu.transpose %218, [1, 0] : vector<16x1xf32> -> vector<1x16xf32>
    %220 = vector.broadcast %217 : vector<16x1xf32> to vector<16x16xf32>
    %221 = vector.broadcast %219 : vector<1x16xf32> to vector<16x16xf32>
    %222 = arith.addf %220, %221 : vector<16x16xf32>
    %cst_97 = arith.constant 0.000000e+00 : f32
    %223 = vector.broadcast %cst_97 : f32 to vector<16x16xf32>
    %224 = arith.cmpf ogt, %222, %223 : vector<16x16xf32>
    %cst_98 = arith.constant 2.000000e-01 : f32
    %225 = vector.broadcast %cst_98 : f32 to vector<16x16xf32>
    %226 = arith.mulf %225, %222 : vector<16x16xf32>
    %227 = arith.select %224, %222, %226 : vector<16x16xi1>, vector<16x16xf32>
    %c0_99 = arith.constant 0 : index
    %c2_100 = arith.constant 2 : index
    %c0_101 = arith.constant 0 : index
    %c0_102 = arith.constant 0 : index
    %228 = vector.load %arg2[%c0_99, %c2_100, %c0_101, %c0_102] : memref<1x4x16x16xf32, #tpu.memory_space<vmem>>, vector<1x1x16x16xf32>
    %229 = vector.shape_cast %228 : vector<1x1x16x16xf32> to vector<16x16xf32>
    %cst_103 = arith.constant 0.000000e+00 : f32
    %230 = vector.broadcast %cst_103 : f32 to vector<16x16xf32>
    %231 = arith.cmpf ogt, %229, %230 : vector<16x16xf32>
    %cst_104 = arith.constant -1.000000e+09 : f32
    %232 = vector.broadcast %cst_104 : f32 to vector<16x16xf32>
    %233 = arith.select %231, %227, %232 : vector<16x16xi1>, vector<16x16xf32>
    %cst_105 = arith.constant dense<0xFF800000> : vector<16xf32>
    %234 = vector.multi_reduction <maximumf>, %233, %cst_105 [1] : vector<16x16xf32> to vector<16xf32>
    %235 = vector.shape_cast %234 : vector<16xf32> to vector<16x1xf32>
    %236 = vector.broadcast %235 : vector<16x1xf32> to vector<16x16xf32>
    %237 = arith.subf %233, %236 : vector<16x16xf32>
    %238 = math.exp %237 : vector<16x16xf32>
    %cst_106 = arith.constant dense<0.000000e+00> : vector<16xf32>
    %239 = vector.multi_reduction <add>, %238, %cst_106 [1] : vector<16x16xf32> to vector<16xf32>
    %240 = vector.shape_cast %239 : vector<16xf32> to vector<16x1xf32>
    %241 = tpu.reciprocal %240 {approx = true} : vector<16x1xf32> -> vector<16x1xf32>
    %242 = vector.broadcast %241 : vector<16x1xf32> to vector<16x16xf32>
    %243 = arith.mulf %238, %242 : vector<16x16xf32>
    %244 = vector.extract_strided_slice %146 {offsets = [32, 0], sizes = [16, 8], strides = [1, 1]} : vector<64x8xf32> to vector<16x8xf32>
    %cst_107 = arith.constant dense<0.000000e+00> : vector<16x8xf32>
    %245 = tpu.matmul %243, %244, %cst_107 {dimension_numbers = #tpu.dot_dimension_numbers<[1], [0], [0], [1], [0, 0, 1, 1], [], []>} : vector<16x16xf32>, vector<16x8xf32>, vector<16x8xf32> -> vector<16x8xf32>
    %246 = vector.extract_strided_slice %152 {offsets = [48, 0], sizes = [16, 1], strides = [1, 1]} : vector<64x1xf32> to vector<16x1xf32>
    %247 = vector.extract_strided_slice %158 {offsets = [48, 0], sizes = [16, 1], strides = [1, 1]} : vector<64x1xf32> to vector<16x1xf32>
    %248 = tpu.transpose %247, [1, 0] : vector<16x1xf32> -> vector<1x16xf32>
    %249 = vector.broadcast %246 : vector<16x1xf32> to vector<16x16xf32>
    %250 = vector.broadcast %248 : vector<1x16xf32> to vector<16x16xf32>
    %251 = arith.addf %249, %250 : vector<16x16xf32>
    %cst_108 = arith.constant 0.000000e+00 : f32
    %252 = vector.broadcast %cst_108 : f32 to vector<16x16xf32>
    %253 = arith.cmpf ogt, %251, %252 : vector<16x16xf32>
    %cst_109 = arith.constant 2.000000e-01 : f32
    %254 = vector.broadcast %cst_109 : f32 to vector<16x16xf32>
    %255 = arith.mulf %254, %251 : vector<16x16xf32>
    %256 = arith.select %253, %251, %255 : vector<16x16xi1>, vector<16x16xf32>
    %c0_110 = arith.constant 0 : index
    %c3_111 = arith.constant 3 : index
    %c0_112 = arith.constant 0 : index
    %c0_113 = arith.constant 0 : index
    %257 = vector.load %arg2[%c0_110, %c3_111, %c0_112, %c0_113] : memref<1x4x16x16xf32, #tpu.memory_space<vmem>>, vector<1x1x16x16xf32>
    %258 = vector.shape_cast %257 : vector<1x1x16x16xf32> to vector<16x16xf32>
    %cst_114 = arith.constant 0.000000e+00 : f32
    %259 = vector.broadcast %cst_114 : f32 to vector<16x16xf32>
    %260 = arith.cmpf ogt, %258, %259 : vector<16x16xf32>
    %cst_115 = arith.constant -1.000000e+09 : f32
    %261 = vector.broadcast %cst_115 : f32 to vector<16x16xf32>
    %262 = arith.select %260, %256, %261 : vector<16x16xi1>, vector<16x16xf32>
    %cst_116 = arith.constant dense<0xFF800000> : vector<16xf32>
    %263 = vector.multi_reduction <maximumf>, %262, %cst_116 [1] : vector<16x16xf32> to vector<16xf32>
    %264 = vector.shape_cast %263 : vector<16xf32> to vector<16x1xf32>
    %265 = vector.broadcast %264 : vector<16x1xf32> to vector<16x16xf32>
    %266 = arith.subf %262, %265 : vector<16x16xf32>
    %267 = math.exp %266 : vector<16x16xf32>
    %cst_117 = arith.constant dense<0.000000e+00> : vector<16xf32>
    %268 = vector.multi_reduction <add>, %267, %cst_117 [1] : vector<16x16xf32> to vector<16xf32>
    %269 = vector.shape_cast %268 : vector<16xf32> to vector<16x1xf32>
    %270 = tpu.reciprocal %269 {approx = true} : vector<16x1xf32> -> vector<16x1xf32>
    %271 = vector.broadcast %270 : vector<16x1xf32> to vector<16x16xf32>
    %272 = arith.mulf %267, %271 : vector<16x16xf32>
    %273 = vector.extract_strided_slice %146 {offsets = [48, 0], sizes = [16, 8], strides = [1, 1]} : vector<64x8xf32> to vector<16x8xf32>
    %cst_118 = arith.constant dense<0.000000e+00> : vector<16x8xf32>
    %274 = tpu.matmul %272, %273, %cst_118 {dimension_numbers = #tpu.dot_dimension_numbers<[1], [0], [0], [1], [0, 0, 1, 1], [], []>} : vector<16x16xf32>, vector<16x8xf32>, vector<16x8xf32> -> vector<16x8xf32>
    %275 = tpu.concatenate %187, %216, %245, %274 in 0 : vector<16x8xf32>, vector<16x8xf32>, vector<16x8xf32>, vector<16x8xf32> -> vector<64x8xf32>
    %c1_119 = arith.constant 1 : index
    %c0_120 = arith.constant 0 : index
    %c0_121 = arith.constant 0 : index
    %276 = vector.load %arg7[%c1_119, %c0_120, %c0_121] : memref<2x8x16xf32, #tpu.memory_space<vmem>>, vector<1x8x16xf32>
    %277 = vector.shape_cast %276 : vector<1x8x16xf32> to vector<8x16xf32>
    %cst_122 = arith.constant dense<0.000000e+00> : vector<64x16xf32>
    %278 = tpu.matmul %275, %277, %cst_122 {dimension_numbers = #tpu.dot_dimension_numbers<[1], [0], [0], [1], [0, 0, 1, 1], [], []>} : vector<64x8xf32>, vector<8x16xf32>, vector<64x16xf32> -> vector<64x16xf32>
    %c1_123 = arith.constant 1 : index
    %c0_124 = arith.constant 0 : index
    %c0_125 = arith.constant 0 : index
    %279 = vector.load %arg8[%c1_123, %c0_124, %c0_125] : memref<2x1x16xf32, #tpu.memory_space<vmem>>, vector<1x1x16xf32>
    %280 = vector.shape_cast %279 : vector<1x1x16xf32> to vector<1x16xf32>
    %281 = vector.broadcast %280 : vector<1x16xf32> to vector<64x16xf32>
    %282 = arith.addf %278, %281 : vector<64x16xf32>
    %cst_126 = arith.constant 0.000000e+00 : f32
    %283 = vector.broadcast %cst_126 : f32 to vector<64x16xf32>
    %284 = arith.maximumf %282, %283 : vector<64x16xf32>
    %c0_127 = arith.constant 0 : index
    %c0_128 = arith.constant 0 : index
    %285 = vector.load %arg3[%c0_127, %c0_128] : memref<16x16xf32, #tpu.memory_space<vmem>>, vector<16x16xf32>
    %286 = vector.extract_strided_slice %1 {offsets = [0, 0, 0], sizes = [1, 16, 2], strides = [1, 1, 1]} : vector<4x16x4xf32> to vector<1x16x2xf32>
    %287 = vector.shape_cast %286 : vector<1x16x2xf32> to vector<16x2xf32>
    %cst_129 = arith.constant dense<0.000000e+00> : vector<16x2xf32>
    %288 = tpu.matmul %285, %287, %cst_129 {dimension_numbers = #tpu.dot_dimension_numbers<[1], [0], [0], [1], [0, 0, 1, 1], [], []>} : vector<16x16xf32>, vector<16x2xf32>, vector<16x2xf32> -> vector<16x2xf32>
    %289 = vector.extract_strided_slice %1 {offsets = [1, 0, 0], sizes = [1, 16, 2], strides = [1, 1, 1]} : vector<4x16x4xf32> to vector<1x16x2xf32>
    %290 = vector.shape_cast %289 : vector<1x16x2xf32> to vector<16x2xf32>
    %cst_130 = arith.constant dense<0.000000e+00> : vector<16x2xf32>
    %291 = tpu.matmul %285, %290, %cst_130 {dimension_numbers = #tpu.dot_dimension_numbers<[1], [0], [0], [1], [0, 0, 1, 1], [], []>} : vector<16x16xf32>, vector<16x2xf32>, vector<16x2xf32> -> vector<16x2xf32>
    %292 = vector.extract_strided_slice %1 {offsets = [2, 0, 0], sizes = [1, 16, 2], strides = [1, 1, 1]} : vector<4x16x4xf32> to vector<1x16x2xf32>
    %293 = vector.shape_cast %292 : vector<1x16x2xf32> to vector<16x2xf32>
    %cst_131 = arith.constant dense<0.000000e+00> : vector<16x2xf32>
    %294 = tpu.matmul %285, %293, %cst_131 {dimension_numbers = #tpu.dot_dimension_numbers<[1], [0], [0], [1], [0, 0, 1, 1], [], []>} : vector<16x16xf32>, vector<16x2xf32>, vector<16x2xf32> -> vector<16x2xf32>
    %295 = vector.extract_strided_slice %1 {offsets = [3, 0, 0], sizes = [1, 16, 2], strides = [1, 1, 1]} : vector<4x16x4xf32> to vector<1x16x2xf32>
    %296 = vector.shape_cast %295 : vector<1x16x2xf32> to vector<16x2xf32>
    %cst_132 = arith.constant dense<0.000000e+00> : vector<16x2xf32>
    %297 = tpu.matmul %285, %296, %cst_132 {dimension_numbers = #tpu.dot_dimension_numbers<[1], [0], [0], [1], [0, 0, 1, 1], [], []>} : vector<16x16xf32>, vector<16x2xf32>, vector<16x2xf32> -> vector<16x2xf32>
    %298 = tpu.concatenate %288, %291, %294, %297 in 0 : vector<16x2xf32>, vector<16x2xf32>, vector<16x2xf32>, vector<16x2xf32> -> vector<64x2xf32>
    %c0_133 = arith.constant 0 : index
    %c0_134 = arith.constant 0 : index
    %299 = vector.load %arg9[%c0_133, %c0_134] : memref<2x32xf32, #tpu.memory_space<vmem>>, vector<2x32xf32>
    %cst_135 = arith.constant dense<0.000000e+00> : vector<64x32xf32>
    %300 = tpu.matmul %298, %299, %cst_135 {dimension_numbers = #tpu.dot_dimension_numbers<[1], [0], [0], [1], [0, 0, 1, 1], [], []>} : vector<64x2xf32>, vector<2x32xf32>, vector<64x32xf32> -> vector<64x32xf32>
    %c0_136 = arith.constant 0 : index
    %c0_137 = arith.constant 0 : index
    %301 = vector.load %arg10[%c0_136, %c0_137] : memref<1x32xf32, #tpu.memory_space<vmem>>, vector<1x32xf32>
    %302 = vector.broadcast %301 : vector<1x32xf32> to vector<64x32xf32>
    %303 = arith.addf %300, %302 : vector<64x32xf32>
    %cst_138 = arith.constant 0.000000e+00 : f32
    %304 = vector.broadcast %cst_138 : f32 to vector<64x32xf32>
    %305 = arith.maximumf %303, %304 : vector<64x32xf32>
    %c0_139 = arith.constant 0 : index
    %c0_140 = arith.constant 0 : index
    %306 = vector.load %arg11[%c0_139, %c0_140] : memref<32x8xf32, #tpu.memory_space<vmem>>, vector<32x8xf32>
    %cst_141 = arith.constant dense<0.000000e+00> : vector<64x8xf32>
    %307 = tpu.matmul %305, %306, %cst_141 {dimension_numbers = #tpu.dot_dimension_numbers<[1], [0], [0], [1], [0, 0, 1, 1], [], []>} : vector<64x32xf32>, vector<32x8xf32>, vector<64x8xf32> -> vector<64x8xf32>
    %c0_142 = arith.constant 0 : index
    %c0_143 = arith.constant 0 : index
    %308 = vector.load %arg12[%c0_142, %c0_143] : memref<1x8xf32, #tpu.memory_space<vmem>>, vector<1x8xf32>
    %309 = vector.broadcast %308 : vector<1x8xf32> to vector<64x8xf32>
    %310 = arith.addf %307, %309 : vector<64x8xf32>
    %311 = tpu.concatenate %143, %284, %310 in 1 : vector<64x16xf32>, vector<64x16xf32>, vector<64x8xf32> -> vector<64x40xf32>
    %312 = vector.extract_strided_slice %311 {offsets = [0, 0], sizes = [16, 40], strides = [1, 1]} : vector<64x40xf32> to vector<16x40xf32>
    %c0_144 = arith.constant 0 : index
    %c0_145 = arith.constant 0 : index
    %313 = memref.load %arg13[%c0_144, %c0_145] : memref<1x4xf32, #tpu.memory_space<smem>>
    %314 = vector.broadcast %313 : f32 to vector<16x40xf32>
    %315 = arith.mulf %312, %314 : vector<16x40xf32>
    %316 = vector.extract_strided_slice %311 {offsets = [16, 0], sizes = [16, 40], strides = [1, 1]} : vector<64x40xf32> to vector<16x40xf32>
    %c0_146 = arith.constant 0 : index
    %c1_147 = arith.constant 1 : index
    %317 = memref.load %arg13[%c0_146, %c1_147] : memref<1x4xf32, #tpu.memory_space<smem>>
    %318 = vector.broadcast %317 : f32 to vector<16x40xf32>
    %319 = arith.mulf %316, %318 : vector<16x40xf32>
    %320 = arith.addf %315, %319 : vector<16x40xf32>
    %321 = vector.extract_strided_slice %311 {offsets = [32, 0], sizes = [16, 40], strides = [1, 1]} : vector<64x40xf32> to vector<16x40xf32>
    %c0_148 = arith.constant 0 : index
    %c2_149 = arith.constant 2 : index
    %322 = memref.load %arg13[%c0_148, %c2_149] : memref<1x4xf32, #tpu.memory_space<smem>>
    %323 = vector.broadcast %322 : f32 to vector<16x40xf32>
    %324 = arith.mulf %321, %323 : vector<16x40xf32>
    %325 = arith.addf %320, %324 : vector<16x40xf32>
    %326 = vector.extract_strided_slice %311 {offsets = [48, 0], sizes = [16, 40], strides = [1, 1]} : vector<64x40xf32> to vector<16x40xf32>
    %c0_150 = arith.constant 0 : index
    %c3_151 = arith.constant 3 : index
    %327 = memref.load %arg13[%c0_150, %c3_151] : memref<1x4xf32, #tpu.memory_space<smem>>
    %328 = vector.broadcast %327 : f32 to vector<16x40xf32>
    %329 = arith.mulf %326, %328 : vector<16x40xf32>
    %330 = arith.addf %325, %329 : vector<16x40xf32>
    %c0_152 = arith.constant 0 : index
    %c0_153 = arith.constant 0 : index
    %331 = memref.load %arg14[%c0_152, %c0_153] : memref<1x1xf32, #tpu.memory_space<smem>>
    %332 = vector.broadcast %331 : f32 to vector<16x40xf32>
    %333 = arith.addf %330, %332 : vector<16x40xf32>
    %c0_154 = arith.constant 0 : index
    %c0_155 = arith.constant 0 : index
    %334 = vector.load %arg15[%c0_154, %c0_155] : memref<40x2xf32, #tpu.memory_space<vmem>>, vector<40x2xf32>
    %cst_156 = arith.constant dense<0.000000e+00> : vector<16x2xf32>
    %335 = tpu.matmul %333, %334, %cst_156 {dimension_numbers = #tpu.dot_dimension_numbers<[1], [0], [0], [1], [0, 0, 1, 1], [], []>} : vector<16x40xf32>, vector<40x2xf32>, vector<16x2xf32> -> vector<16x2xf32>
    %c0_157 = arith.constant 0 : index
    %c0_158 = arith.constant 0 : index
    %336 = vector.load %arg16[%c0_157, %c0_158] : memref<1x2xf32, #tpu.memory_space<vmem>>, vector<1x2xf32>
    %337 = vector.broadcast %336 : vector<1x2xf32> to vector<16x2xf32>
    %338 = arith.addf %335, %337 : vector<16x2xf32>
    %c0_159 = arith.constant 0 : index
    %c0_160 = arith.constant 0 : index
    %c0_161 = arith.constant 0 : index
    %339 = vector.load %arg17[%c0_159, %c0_160, %c0_161] : memref<1x16x2xf32, #tpu.memory_space<vmem>>, vector<1x16x2xf32>
    %340 = vector.shape_cast %339 : vector<1x16x2xf32> to vector<16x2xf32>
    %341 = vector.shape_cast %338 : vector<16x2xf32> to vector<1x16x2xf32>
    tpu.vector_store %arg17[%c0_159, %c0_160, %c0_161], %341 {strides = array<i32>} : memref<1x16x2xf32, #tpu.memory_space<vmem>>, vector<1x16x2xf32>,
    return
  }
  func.func @transform_0(%arg0: i32) -> (i32, i32, i32, i32) {
    %c0_i32 = arith.constant 0 : i32
    %c0_i32_0 = arith.constant 0 : i32
    %c0_i32_1 = arith.constant 0 : i32
    %c0_i32_2 = arith.constant 0 : i32
    return %arg0, %c0_i32, %c0_i32_0, %c0_i32_1 : i32, i32, i32, i32
  }
  func.func @transform_1(%arg0: i32) -> (i32, i32, i32, i32) {
    %c0_i32 = arith.constant 0 : i32
    %c0_i32_0 = arith.constant 0 : i32
    %c0_i32_1 = arith.constant 0 : i32
    %c0_i32_2 = arith.constant 0 : i32
    return %arg0, %c0_i32, %c0_i32_0, %c0_i32_1 : i32, i32, i32, i32
  }
  func.func @transform_2(%arg0: i32) -> (i32, i32) {
    %c0_i32 = arith.constant 0 : i32
    %c0_i32_0 = arith.constant 0 : i32
    %c0_i32_1 = arith.constant 0 : i32
    return %c0_i32, %c0_i32_0 : i32, i32
  }
  func.func @transform_3(%arg0: i32) -> (i32, i32, i32) {
    %c0_i32 = arith.constant 0 : i32
    %c0_i32_0 = arith.constant 0 : i32
    %c0_i32_1 = arith.constant 0 : i32
    %c0_i32_2 = arith.constant 0 : i32
    return %c0_i32, %c0_i32_0, %c0_i32_1 : i32, i32, i32
  }
  func.func @transform_4(%arg0: i32) -> (i32, i32, i32) {
    %c0_i32 = arith.constant 0 : i32
    %c0_i32_0 = arith.constant 0 : i32
    %c0_i32_1 = arith.constant 0 : i32
    %c0_i32_2 = arith.constant 0 : i32
    return %c0_i32, %c0_i32_0, %c0_i32_1 : i32, i32, i32
  }
  func.func @transform_5(%arg0: i32) -> (i32, i32, i32) {
    %c0_i32 = arith.constant 0 : i32
    %c0_i32_0 = arith.constant 0 : i32
    %c0_i32_1 = arith.constant 0 : i32
    %c0_i32_2 = arith.constant 0 : i32
    return %c0_i32, %c0_i32_0, %c0_i32_1 : i32, i32, i32
  }
  func.func @transform_6(%arg0: i32) -> (i32, i32, i32) {
    %c0_i32 = arith.constant 0 : i32
    %c0_i32_0 = arith.constant 0 : i32
    %c0_i32_1 = arith.constant 0 : i32
    %c0_i32_2 = arith.constant 0 : i32
    return %c0_i32, %c0_i32_0, %c0_i32_1 : i32, i32, i32
  }
  func.func @transform_7(%arg0: i32) -> (i32, i32, i32) {
    %c0_i32 = arith.constant 0 : i32
    %c0_i32_0 = arith.constant 0 : i32
    %c0_i32_1 = arith.constant 0 : i32
    %c0_i32_2 = arith.constant 0 : i32
    return %c0_i32, %c0_i32_0, %c0_i32_1 : i32, i32, i32
  }
  func.func @transform_8(%arg0: i32) -> (i32, i32) {
    %c0_i32 = arith.constant 0 : i32
    %c0_i32_0 = arith.constant 0 : i32
    %c0_i32_1 = arith.constant 0 : i32
    return %c0_i32, %c0_i32_0 : i32, i32
  }
  func.func @transform_9(%arg0: i32) -> (i32, i32) {
    %c0_i32 = arith.constant 0 : i32
    %c0_i32_0 = arith.constant 0 : i32
    %c0_i32_1 = arith.constant 0 : i32
    return %c0_i32, %c0_i32_0 : i32, i32
  }
  func.func @transform_10(%arg0: i32) -> (i32, i32) {
    %c0_i32 = arith.constant 0 : i32
    %c0_i32_0 = arith.constant 0 : i32
    %c0_i32_1 = arith.constant 0 : i32
    return %c0_i32, %c0_i32_0 : i32, i32
  }
  func.func @transform_11(%arg0: i32) -> (i32, i32) {
    %c0_i32 = arith.constant 0 : i32
    %c0_i32_0 = arith.constant 0 : i32
    %c0_i32_1 = arith.constant 0 : i32
    return %c0_i32, %c0_i32_0 : i32, i32
  }
  func.func @transform_12(%arg0: i32) -> (i32, i32) {
    %c0_i32 = arith.constant 0 : i32
    %c0_i32_0 = arith.constant 0 : i32
    %c0_i32_1 = arith.constant 0 : i32
    return %c0_i32, %c0_i32_0 : i32, i32
  }
  func.func @transform_13(%arg0: i32) -> (i32, i32) {
    %c0_i32 = arith.constant 0 : i32
    %c0_i32_0 = arith.constant 0 : i32
    %c0_i32_1 = arith.constant 0 : i32
    return %c0_i32, %c0_i32_0 : i32, i32
  }
  func.func @transform_14(%arg0: i32) -> (i32, i32) {
    %c0_i32 = arith.constant 0 : i32
    %c0_i32_0 = arith.constant 0 : i32
    %c0_i32_1 = arith.constant 0 : i32
    return %c0_i32, %c0_i32_0 : i32, i32
  }
  func.func @transform_15(%arg0: i32) -> (i32, i32) {
    %c0_i32 = arith.constant 0 : i32
    %c0_i32_0 = arith.constant 0 : i32
    %c0_i32_1 = arith.constant 0 : i32
    return %c0_i32, %c0_i32_0 : i32, i32
  }
  func.func @transform_16(%arg0: i32) -> (i32, i32, i32) {
    %c0_i32 = arith.constant 0 : i32
    %c0_i32_0 = arith.constant 0 : i32
    %c0_i32_1 = arith.constant 0 : i32
    return %arg0, %c0_i32, %c0_i32_0 : i32, i32, i32
  }
}

</mosaic_0001>

<bundles_post_ra>
// kernel: sta_forward.1
= control target key start
LH: loop header
LB: loop body
LE: loop exit
PB: predicated region body
PF: predicated region fallthrough
CT: control target
= control target key end

     0   :  { %s3149_s0 = inlined_call_operand.vmem [shape: f32[2,4,16,4], index: 0, kind: input, shape index: {}]   ;;  %s3150_s1 = inlined_call_operand.vmem [shape: f32[2,4,16,16], index: 1, kind: input, shape index: {}]   ;;  %s3151_s2 = inlined_call_operand.vmem [shape: f32[16,16], index: 2, kind: input, shape index: {}]   ;;  %s3152_s3 = inlined_call_operand.vmem [shape: f32[2,4,8], index: 3, kind: input, shape index: {}]   ;;  %s3153_s4 = inlined_call_operand.vmem [shape: f32[2,1,8], index: 4, kind: input, shape index: {}]   ;;  %s3154_s5 = inlined_call_operand.vmem [shape: f32[2,1,8], index: 5, kind: input, shape index: {}]   ;;  %s3155_s6 = inlined_call_operand.vmem [shape: f32[2,8,16], index: 6, kind: input, shape index: {}]   ;;  %s3156_s7 = inlined_call_operand.vmem [shape: f32[2,1,16], index: 7, kind: input, shape index: {}]   ;;  %s3157_s8 = inlined_call_operand.vmem [shape: f32[2,32], index: 8, kind: input, shape index: {}]   ;;  %s3158_s9 = inlined_call_operand.vmem [shape: f32[1,32], index: 9, kind: input, shape index: {}]   ;;  %s3159_s10 = inlined_call_operand.vmem [shape: f32[32,8], index: 10, kind: input, shape index: {}]   ;;  %s3160_s11 = inlined_call_operand.vmem [shape: f32[1,8], index: 11, kind: input, shape index: {}]   ;;  %s3161_s12 = inlined_call_operand.vmem [shape: f32[1,4], index: 12, kind: input, shape index: {}]   ;;  %s3162_s13 = inlined_call_operand.<no memory space> [shape: f32[1,1], index: 13, kind: input, shape index: {}]   ;;  %s3163_s14 = inlined_call_operand.vmem [shape: f32[40,2], index: 14, kind: input, shape index: {}]   ;;  %s3164_s15 = inlined_call_operand.vmem [shape: f32[1,2], index: 15, kind: input, shape index: {}]   ;;  %s3165_s16 = inlined_call_operand.vmem [shape: f32[2,16,2], index: 16, kind: output, shape index: {}]  }
   0x1   :  { %3166 = sst [smem:[#allocation6_spill]] %s3149_s0 }
   0x2   :  { %21 = sst [smem:[#allocation2]] %s3162_s13 }
   0x3   :  { %22 = vsyncpa [#allocation4], 0  ;;  %s2570_s23 = smov 0  }
   0x4 LB: > { %s2242_s24 = sadd.s32 4294967295, %s2477_s23   ;;  %p2244_p0 = scmp.ge.s32.totalorder %s2477_s23, 1  ;;  %s2477_s23 = sphi %s2570_s23, %s28_s23  }
   0x5   : > { %p405_p1 = scmp.lt.s32.totalorder %s2477_s23, 3  ;;  %s447_s27 = sshll.u32 %s3161_s12, 4  ;;  %s448_s27 = int_to_ptr.vmem [resolvable:$true] %s447_s27 }
   0x6   : > { %p2363_p3 = scmp.eq.s32.totalorder %s2242_s24, 0  ;;  %s2479_s13 = smov [#allocation3]  }
   0x7   : > { %p406_p2 = pnand %p2244_p0, %p405_p1 }
   0x9   : > { %p2359_p4 = pneg %p406_p2  ;;  %485 = sbr.rel (%p406_p2) target bundleno = 3154 (0xc52), region = 84 }
   0xb   : > { %p2360_p5 = pnand %p2363_p3, %p2359_p4 }
   0xd   : > { %2362 = dma.vmem_to_smem (!%p2360_p5), %s448_s27, 16, %s2479_s13, [#allocation4]  }
   0xe   : > { %2472 = dma.done.wait (%p2363_p3), [#allocation4], 16  }
   0xf   : > { %2474 = vsyncadd (%p2363_p3), [#allocation4], 4294967280 }
  0x10   : > { %492 = sfence }
  0x11   : > { %v565_v0 = vld [vmem:[%s3152_s3] sm:$0xf]  ;;  %vm591_vm0 = vcmask 1043456   ;;  %p542_p6 = scmp.lt.s32.totalorder %s2242_s24, 1  ;;  %vm566_vm1 = vcmask 31744   ;;  %s3167_s18 = sld [smem:[#allocation6_spill]] }
  0x12   : > { %2255 = vmatpush.msk.msra.mxu0 %vm591_vm0, %v565_v0  ;;  %v2377_v10 = vld [vmem:[%s3154_s5] ss:$0 sm:$0xff]  ;;  %vm648_vm2 = vcmask 64512   ;;  %vm756_vm5 = vcmask 130048   ;;  %s2480_s28 = smov 16   ;;  %s2481_s0 = smov 32  }
  0x13   : > { %s3169_s24 = smov (!%p542_p6, %s2242_s24), 1  ;;  %v2649_v20 = vld [vmem:[%s3153_s4] ss:$0 sm:$0xff]  ;;  %s3111_s17 = sld [smem:[#allocation3 + $0x2]] }
  0x14   : > { %s2348_s30 = sshll.u32 %s3169_s24, 6  ;;  %s3121_s20 = sld [smem:[#allocation2]] }
  0x15   : > { %s2677_s13 = scalar_lea.vmem %s3150_s1, %s2348_s30  ;;  %s2350_s21 = sshll.u32 %s3169_s24, 4 }
  0x16   : > { %v2683_v51 = vld [vmem:[%s2677_s13 + $0x28] sm:$0xff] }
  0x17   : > { %s2593_s19 = scalar_lea.vmem %s3167_s18, %s2348_s30  ;;  %vm952_vm4 = vcmp.gt.f32.partialorder %v2683_v51, 0.0  ;;  %s3098_s30 = sld [smem:[#allocation3 + $0x1]] }
  0x18   : > { %v2596_v1 = vld [vmem:[%s2593_s19] sm:$0xff]  ;;  %v2601_v2 = vld [vmem:[%s2593_s19 + $0x8] sm:$0xff]  ;;  %v2606_v3 = vld [vmem:[%s2593_s19 + $0x10] sm:$0xff]  ;;  %s3116_s18 = sld [smem:[#allocation3 + $0x3]] }
  0x19   : > { %2256 = vmatmul.msk.f32.vlgmr.msra.gmra.mxu0 %vm566_vm1, %v2596_v1  ;;  %v2611_v4 = vld [vmem:[%s2593_s19 + $0x18] sm:$0xff]  ;;  %v2616_v5 = vld [vmem:[%s2593_s19 + $0x20] sm:$0xff]  ;;  %v2621_v6 = vld [vmem:[%s2593_s19 + $0x28] sm:$0xff] }
  0x1a   : > { %v2626_v7 = vld [vmem:[%s2593_s19 + $0x30] sm:$0xff]  ;;  %v2631_v8 = vld [vmem:[%s2593_s19 + $0x38] sm:$0xff] }
  0x21   : > { %2257 = vmatmul.msk.f32.gmra.mxu0 %vm566_vm1, %v2601_v2 }
  0x29   : > { %2258 = vmatmul.msk.f32.gmra.mxu0 %vm566_vm1, %v2606_v3 }
  0x31   : > { %2259 = vmatmul.msk.f32.gmra.mxu0 %vm566_vm1, %v2611_v4 }
  0x39   : > { %2260 = vmatmul.msk.f32.gmra.mxu0 %vm566_vm1, %v2616_v5 }
  0x41   : > { %2261 = vmatmul.msk.f32.gmra.mxu0 %vm566_vm1, %v2621_v6 }
  0x49   : > { %2262 = vmatmul.msk.f32.gmra.mxu0 %vm566_vm1, %v2626_v7 }
  0x51   : > { %2263 = vmatmul.msk.f32.gmra.mxu0 %vm566_vm1, %v2631_v8 }
  0x96   : > { %v612_v9 = vpop.f32.mrf.mxu0 }
  0x97   : > { %v677_v26 = vmul.f32 %v2377_v10, %v612_v9  ;;  %v640_v30 = vmul.f32 %v2649_v20, %v612_v9 }
  0x99   : > { %v685_v27 = vsel %vm648_vm2, %v677_v26, 0.0  ;;  %v649_v31 = vsel %vm648_vm2, %v640_v30, 0.0 }
  0x9e   : > { %v2638_v11 = vpop.f32.mrf.mxu0 }
  0x9f   : > { %799 = vmatpush.msra.mxu1 %v2638_v11  ;;  %v678_v12 = vmul.f32 %v2377_v10, %v2638_v11 }
  0xa1   : > { %800 = vmatpush.msra.mxu1 %v612_v9  ;;  %v688_v13 = vsel %vm648_vm2, %v678_v12, 0.0  ;;  %v641_v12 = vmul.f32 %v2649_v20, %v2638_v11 }
  0xa2   : > { %689 = vadd.xlane.f32.xlu2 %v688_v13 }
  0xa3   : > { %v652_v13 = vsel %vm648_vm2, %v641_v12, 0.0 }
  0xa6   : > { %v618_v14 = vpop.f32.mrf.mxu0 }
  0xa7   : > { %v679_v28 = vmul.f32 %v2377_v10, %v618_v14  ;;  %v642_v32 = vmul.f32 %v2649_v20, %v618_v14 }
  0xa9   : > { %v691_v29 = vsel %vm648_vm2, %v679_v28, 0.0  ;;  %v655_v33 = vsel %vm648_vm2, %v642_v32, 0.0 }
  0xae   : > { %v621_v15 = vpop.f32.mrf.mxu0 }
  0xaf   : > { %898 = vmatpush.msrb.mxu1 %v621_v15  ;;  %v2643_v16 = vmul.f32 %v2377_v10, %v621_v15  ;;  %v643_v34 = vmul.f32 %v2649_v20, %v621_v15 }
  0xb1   : > { %899 = vmatpush.msrb.mxu1 %v618_v14  ;;  %v658_v36 = vsel %vm648_vm2, %v643_v34, 0.0 }
  0xb6   : > { %v624_v17 = vpop.f32.mrf.mxu0 }
  0xb7   : > { %v681_v18 = vmul.f32 %v2377_v10, %v624_v17  ;;  %v644_v42 = vmul.f32 %v2649_v20, %v624_v17 }
  0xb9   : > { %v697_v19 = vsel %vm648_vm2, %v681_v18, 0.0  ;;  %v661_v43 = vsel %vm648_vm2, %v644_v42, 0.0  ;;  %v2699_v18 = vld [vmem:[%s2677_s13] sm:$0xff] }
  0xba   : > { %698 = vadd.xlane.f32.xlu0 %v697_v19  ;;  %vm752_vm7 = vcmp.gt.f32.partialorder %v2699_v18, 0.0 }
  0xbe   : > { %v627_v21 = vpop.f32.mrf.mxu0 }
  0xbf   : > { %997 = vmatpush.msrb.mxu0 %v627_v21  ;;  %2351 = vmatpush.msra.mxu3 %v627_v21  ;;  %v682_v22 = vmul.f32 %v2377_v10, %v627_v21  ;;  %v645_v23 = vmul.f32 %v2649_v20, %v627_v21 }
  0xc1   : > { %998 = vmatpush.msrb.mxu0 %v624_v17  ;;  %2352 = vmatpush.msra.mxu3 %v624_v17  ;;  %v700_v24 = vsel %vm648_vm2, %v682_v22, 0.0  ;;  %v664_v25 = vsel %vm648_vm2, %v645_v23, 0.0 }
  0xc2   : > { %701 = vadd.xlane.f32.xlu0 %v700_v24  ;;  %665 = vadd.xlane.f32.xlu1 %v664_v25  ;;  %v2709_v25 = vld [vmem:[%s2677_s13 + $0x8] sm:$0xff] }
  0xc3   : > { %vm753_vm9 = vcmp.gt.f32.partialorder %v2709_v25, 0.0 }
  0xc6   : > { %v2661_v35 = vpop.f32.mrf.mxu0 }
  0xc7   : > { %v683_v37 = vmul.f32 %v2377_v10, %v2661_v35 }
  0xc9   : > { %v703_v38 = vsel %vm648_vm2, %v683_v37, 0.0 }
  0xca   : > { %686 = vadd.xlane.f32.xlu0 %v685_v27 }
  0xce   : > { %v2666_v39 = vpop.f32.mrf.mxu0 }
  0xcf   : > { %v684_v40 = vmul.f32 %v2377_v10, %v2666_v39  ;;  %v694_v10 = vsel %vm648_vm2, %v2643_v16, 0.0 }
  0xd1   : > { %v706_v41 = vsel %vm648_vm2, %v684_v40, 0.0 }
  0xd2   : > { %692 = vadd.xlane.f32.xlu0 %v691_v29 }
  0xda   : > { %650 = vadd.xlane.f32.xlu0 %v649_v31 }
  0xe2   : > { %656 = vadd.xlane.f32.xlu0 %v655_v33  ;;  %v646_v33 = vmul.f32 %v2649_v20, %v2661_v35 }
  0xe4   : > { %v667_v34 = vsel %vm648_vm2, %v646_v33, 0.0 }
  0xea   : > { %659 = vadd.xlane.f32.xlu0 %v658_v36 }
  0xf2   : > { %704 = vadd.xlane.f32.xlu0 %v703_v38 }
  0xfa   : > { %707 = vadd.xlane.f32.xlu0 %v706_v41  ;;  %v647_v41 = vmul.f32 %v2649_v20, %v2666_v39 }
  0xfc   : > { %v670_v42 = vsel %vm648_vm2, %v647_v41, 0.0 }
 0x102   : > { %662 = vadd.xlane.f32.xlu0 %v661_v43 }
 0x115   : > { %v690_v57 = vpop.xlane.xlu2 %689 }
 0x12d   : > { %v699_v44 = vpop.xlane.xlu0 %698 }
 0x12e   : > { %907 = vxpose.xlu1.b32.start [1/2] (short) (narrow) %v699_v44, 8  ;;  %v2727_v44 = vld [vmem:[%s2677_s13 + $0x20] sm:$0xff] }
 0x12f   : > { %vm951_vm11 = vcmp.gt.f32.partialorder %v2727_v44, 0.0 }
 0x135   : > { %v702_v45 = vpop.xlane.xlu0 %701  ;;  %v666_v48 = vpop.xlane.xlu1 %665 }
 0x136   : > { %908 = vxpose.xlu1.b32.end [2/2] (short) (narrow) %v702_v45, 8 }
 0x13d   : > { %v687_v46 = vpop.xlane.xlu0 %686 }
 0x145   : > { %v693_v47 = vpop.xlane.xlu0 %692 }
 0x146   : > { %808 = vxpose.xlu1.b32.start [1/2] (short) (narrow) %v693_v47, 8 }
 0x14d   : > { %v651_v17 = vpop.xlane.xlu0 %650 }
 0x155   : > { %v657_v31 = vpop.xlane.xlu0 %656 }
 0x15d   : > { %v660_v32 = vpop.xlane.xlu0 %659 }
 0x165   : > { %v705_v36 = vpop.xlane.xlu0 %704 }
 0x16d   : > { %v708_v37 = vpop.xlane.xlu0 %707 }
 0x175   : > { %v663_v38 = vpop.xlane.xlu0 %662 }
 0x1d2   : > { %v2679_v49 = vpop.trf.xlu1 }
 0x1d3   : > { %v939_v50 = vperm.slane %v2679_v49, 0  ;;  %v2737_v49 = vld [vmem:[%s2677_s13 + $0x10] sm:$0xff] }
 0x1d4   : > { %vm852_vm13 = vcmp.gt.f32.partialorder %v2737_v49, 0.0 }
 0x1d5   : > { %v941_v52 = vadd.f32 %v939_v50, %v666_v48  ;;  %v940_v40 = vadd.f32 %v939_v50, %v663_v38 }
 0x1d7   : > { %vm943_vm3 = vcmp.gt.f32.partialorder %v941_v52, 0.0  ;;  %v945_v53 = vmul.f32 0.2, %v941_v52  ;;  %v944_v43 = vmul.f32 0.2, %v940_v40  ;;  %vm942_vm10 = vcmp.gt.f32.partialorder %v940_v40, 0.0 }
 0x1d9   : > { %v947_v54 = vsel %vm943_vm3, %v941_v52, %v945_v53  ;;  %v946_v45 = vsel %vm942_vm10, %v940_v40, %v944_v43 }
 0x1da   : > { %v954_v55 = vsel %vm952_vm4, %v947_v54, -1e+09 }
 0x1db   : > { %v958_v56 = vsel %vm756_vm5, %v954_v55, -inf }
 0x1dc   : > { %959 = vmax.xlane.f32.xlu2 %v958_v56 }
 0x24f   : > { %v960_v58 = vpop.xlane.xlu2 %959 }
 0x250   : > { %v962_v59 = vsub.f32 %v954_v55, %v960_v58 }
 0x252   : > { %v965_v60 = vmul.f32 1.442695, %v962_v59 }
 0x254   : > { %2386 = vpow2.f32 %v965_v60 }
 0x25a   : > { %v2387_v61 = vpop.eup %2386 }
 0x25b   : > { %v970_v62 = vsel %vm756_vm5, %v2387_v61, 0.0 }
 0x25c   : > { %971 = vadd.xlane.f32.xlu2 %v970_v62 }
 0x285   : > { %709 = vxpose.xlu2.b32.start [1/2] (short) (narrow) %v687_v46, 8  ;;  %v2732_v46 = vsel %vm951_vm11, %v946_v45, -1e+09 }
 0x286   : > { %v955_v47 = vsel %vm756_vm5, %v2732_v46, -inf }
 0x28d   : > { %710 = vxpose.xlu2.b32.end [2/2] (short) (narrow) %v690_v57, 8  ;;  %v2743_v57 = vld [vmem:[%s2677_s13 + $0x18] sm:$0xff] }
 0x28e   : > { %vm853_vm15 = vcmp.gt.f32.partialorder %v2743_v57, 0.0 }
 0x2cf   : > { %v972_v63 = vpop.xlane.xlu2 %971 }
 0x2d0   : > { %2388 = vrcp.f32 %v972_v63  ;;  %v2286_v63 = vld [vmem:[%s3152_s3 + $0x4] sm:$0xf] }
 0x2d1   : > { %2287 = vmatpush.msk.msrb.mxu3 %vm591_vm0, %v2286_v63 }
 0x2d6   : > { %v2389_v0 = vpop.eup %2388 }
 0x2d7   : > { %v976_v9 = vmul.f32 %v2389_v0, %v2387_v61 }
 0x2d9   : > { %2273 = vmatmul.msk.f32.vlgmr.msra.gmra.mxu3 %vm756_vm5, %v976_v9 }
 0x2da   : > { %2353 = vmatpush.msra.mxu3 %v2621_v6 }
 0x2dc   : > { %2354 = vmatpush.msra.mxu3 %v2616_v5 }
 0x2e1   : > { %2288 = vmatmul.msk.f32.vlgmr.msrb.gmra.mxu3 %vm566_vm1, %v2596_v1 }
 0x2e9   : > { %2289 = vmatmul.msk.f32.gmra.mxu3 %vm566_vm1, %v2601_v2 }
 0x2f1   : > { %2290 = vmatmul.msk.f32.gmra.mxu3 %vm566_vm1, %v2606_v3 }
 0x2f9   : > { %2291 = vmatmul.msk.f32.gmra.mxu3 %vm566_vm1, %v2611_v4 }
 0x2fe   : > { %695 = vadd.xlane.f32.xlu2 %v694_v10 }
 0x301   : > { %2292 = vmatmul.msk.f32.gmra.mxu3 %vm566_vm1, %v2616_v5 }
 0x306   : > { %653 = vadd.xlane.f32.xlu2 %v652_v13 }
 0x309   : > { %2293 = vmatmul.msk.f32.gmra.mxu3 %vm566_vm1, %v2621_v6 }
 0x311   : > { %2294 = vmatmul.msk.f32.gmra.mxu3 %vm566_vm1, %v2626_v7 }
 0x319   : > { %2295 = vmatmul.msk.f32.gmra.mxu3 %vm566_vm1, %v2631_v8 }
 0x31e   : > { %v725_v14 = vpop.trf.xlu2 }
 0x31f   : > { %v741_v15 = vperm.slane %v725_v14, 0 }
 0x321   : > { %v742_v19 = vadd.f32 %v741_v15, %v651_v17 }
 0x323   : > { %vm744_vm6 = vcmp.gt.f32.partialorder %v742_v19, 0.0  ;;  %v746_v21 = vmul.f32 0.2, %v742_v19 }
 0x325   : > { %v748_v22 = vsel %vm744_vm6, %v742_v19, %v746_v21  ;;  %v2766_v19 = vld [vmem:[%s2677_s13 + $0x30] sm:$0xff]  ;;  %v2769_v21 = vld [vmem:[%s2677_s13 + $0x38] sm:$0xff] }
 0x326   : > { %v2704_v16 = vsel %vm752_vm7, %v748_v22, -1e+09  ;;  %vm1050_vm0 = vcmp.gt.f32.partialorder %v2766_v19, 0.0  ;;  %vm1051_vm3 = vcmp.gt.f32.partialorder %v2769_v21, 0.0 }
 0x327   : > { %v757_v11 = vsel %vm756_vm5, %v2704_v16, -inf }
 0x328   : > { %758 = vmax.xlane.f32.xlu0 %v757_v11 }
 0x330   : > { %668 = vadd.xlane.f32.xlu0 %v667_v34 }
 0x371   : > { %v696_v23 = vpop.xlane.xlu2 %695 }
 0x372   : > { %809 = vxpose.xlu1.b32.end [2/2] (short) (narrow) %v696_v23, 8 }
 0x379   : > { %v654_v24 = vpop.xlane.xlu2 %653 }
 0x37a   : > { %v743_v26 = vadd.f32 %v741_v15, %v654_v24 }
 0x37c   : > { %v747_v27 = vmul.f32 0.2, %v743_v26  ;;  %vm745_vm8 = vcmp.gt.f32.partialorder %v743_v26, 0.0 }
 0x37e   : > { %v749_v28 = vsel %vm745_vm8, %v743_v26, %v747_v27 }
 0x37f   : > { %v2714_v29 = vsel %vm753_vm9, %v749_v28, -1e+09 }
 0x380   : > { %v760_v30 = vsel %vm756_vm5, %v2714_v29, -inf }
 0x381   : > { %761 = vmax.xlane.f32.xlu2 %v760_v30 }
 0x39b   : > { %v759_v62 = vpop.xlane.xlu0 %758 }
 0x39c   : > { %v763_v13 = vsub.f32 %v2704_v16, %v759_v62 }
 0x39e   : > { %v765_v22 = vmul.f32 1.442695, %v763_v13 }
 0x3a0   : > { %2390 = vpow2.f32 %v765_v22 }
 0x3a3   : > { %v669_v0 = vpop.xlane.xlu0 %668 }
 0x3d2   : > { %671 = vadd.xlane.f32.xlu1 %v670_v42 }
 0x3da   : > { %956 = vmax.xlane.f32.xlu1 %v955_v47 }
 0x3f4   : > { %v762_v24 = vpop.xlane.xlu2 %761 }
 0x3f5   : > { %v764_v30 = vsub.f32 %v2714_v29, %v762_v24  ;;  %v2391_v29 = vpop.eup %2390 }
 0x3f6   : > { %v769_v45 = vsel %vm756_vm5, %v2391_v29, 0.0 }
 0x3f7   : > { %v767_v40 = vmul.f32 1.442695, %v764_v30 }
 0x40e   : > { %v824_v20 = vpop.trf.xlu1 }
 0x40f   : > { %v840_v48 = vperm.slane %v824_v20, 0 }
 0x411   : > { %v841_v50 = vadd.f32 %v840_v48, %v657_v31  ;;  %v842_v52 = vadd.f32 %v840_v48, %v660_v32 }
 0x413   : > { %vm843_vm12 = vcmp.gt.f32.partialorder %v841_v50, 0.0  ;;  %v845_v53 = vmul.f32 0.2, %v841_v50  ;;  %v846_v55 = vmul.f32 0.2, %v842_v52  ;;  %vm844_vm14 = vcmp.gt.f32.partialorder %v842_v52, 0.0 }
 0x415   : > { %v847_v54 = vsel %vm843_vm12, %v841_v50, %v845_v53  ;;  %v848_v59 = vsel %vm844_vm14, %v842_v52, %v846_v55  ;;  %v2803_v55 = vpop.f32.mrf.mxu3 }
 0x416   : > { %v854_v56 = vsel %vm852_vm13, %v847_v54, -1e+09  ;;  %v855_v60 = vsel %vm853_vm15, %v848_v59, -1e+09 }
 0x417   : > { %v856_v58 = vsel %vm756_vm5, %v854_v56, -inf  ;;  %v859_v61 = vsel %vm756_vm5, %v855_v60, -inf }
 0x418   : > { %857 = vmax.xlane.f32.xlu0 %v856_v58 }
 0x41d   : > { %v2805_v7 = vpop.f32.mrf.mxu3 }
 0x420   : > { %860 = vmax.xlane.f32.xlu0 %v859_v61 }
 0x425   : > { %v2815_v59 = vpop.f32.mrf.mxu3 }
 0x445   : > { %v672_v12 = vpop.xlane.xlu1 %671 }
 0x449   : > { %1006 = vxpose.xlu0.b32.start [1/2] (short) (narrow) %v705_v36, 8 }
 0x44d   : > { %v957_v27 = vpop.xlane.xlu1 %956 }
 0x44e   : > { %v961_v33 = vsub.f32 %v2732_v46, %v957_v27 }
 0x450   : > { %v963_v41 = vmul.f32 1.442695, %v961_v33 }
 0x451   : > { %1007 = vxpose.xlu0.b32.end [2/2] (short) (narrow) %v708_v37, 8 }
 0x48b   : > { %v858_v9 = vpop.xlane.xlu0 %857 }
 0x48c   : > { %v862_v14 = vsub.f32 %v854_v56, %v858_v9  ;;  %v2810_v56 = vld [vmem:[%s3154_s5 + $0x1] ss:$0 sm:$0xff] }
 0x48d   : > { %v1271_v58 = vmul.f32 %v2810_v56, %v2805_v7 }
 0x48e   : > { %v864_v26 = vmul.f32 1.442695, %v862_v14 }
 0x48f   : > { %v1279_v8 = vsel %vm648_vm2, %v1271_v58, 0.0 }
 0x490   : > { %2392 = vpow2.f32 %v864_v26 }
 0x491   : > { %2394 = vpow2.f32 %v767_v40 }
 0x492   : > { %2396 = vpow2.f32 %v963_v41 }
 0x493   : > { %v861_v10 = vpop.xlane.xlu0 %860 }
 0x494   : > { %v863_v43 = vsub.f32 %v855_v60, %v861_v10  ;;  %v2820_v60 = vld [vmem:[%s3153_s4 + $0x1] ss:$0 sm:$0xff]  ;;  %v2825_v10 = vpop.f32.mrf.mxu3 }
 0x495   : > { %v1235_v61 = vmul.f32 %v2820_v60, %v2815_v59  ;;  %v1273_v14 = vmul.f32 %v2810_v56, %v2825_v10  ;;  %v1236_v27 = vmul.f32 %v2820_v60, %v2825_v10  ;;  %v1234_v41 = vmul.f32 %v2820_v60, %v2805_v7 }
 0x496   : > { %v2785_v42 = vpop.eup %2392  ;;  %v866_v47 = vmul.f32 1.442695, %v863_v43 }
 0x497   : > { %v868_v46 = vsel %vm756_vm5, %v2785_v42, 0.0  ;;  %v2790_v20 = vpop.eup %2394  ;;  %v1245_v62 = vsel %vm648_vm2, %v1235_v61, 0.0 }
 0x498   : > { %v2397_v48 = vpop.eup %2396  ;;  %2398 = vpow2.f32 %v866_v47  ;;  %v772_v50 = vsel %vm756_vm5, %v2790_v20, 0.0 }
 0x499   : > { %v967_v52 = vsel %vm756_vm5, %v2397_v48, 0.0 }
 0x49e   : > { %v2799_v53 = vpop.eup %2398 }
 0x49f   : > { %v871_v54 = vsel %vm756_vm5, %v2799_v53, 0.0 }
 0x4ed   : > { %v1022_v15 = vpop.trf.xlu0 }
 0x4ee   : > { %v1038_v17 = vperm.slane %v1022_v15, 0  ;;  %v1285_v15 = vsel %vm648_vm2, %v1273_v14, 0.0 }
 0x4f0   : > { %v1039_v11 = vadd.f32 %v1038_v17, %v669_v0  ;;  %v1040_v23 = vadd.f32 %v1038_v17, %v672_v12 }
 0x4f2   : > { %vm1041_vm6 = vcmp.gt.f32.partialorder %v1039_v11, 0.0  ;;  %v1043_v28 = vmul.f32 0.2, %v1039_v11  ;;  %vm1042_vm8 = vcmp.gt.f32.partialorder %v1040_v23, 0.0  ;;  %v1044_v16 = vmul.f32 0.2, %v1040_v23 }
 0x4f4   : > { %v1045_v31 = vsel %vm1041_vm6, %v1039_v11, %v1043_v28  ;;  %v1046_v32 = vsel %vm1042_vm8, %v1040_v23, %v1044_v16  ;;  %v2830_v23 = vpop.f32.mrf.mxu3 }
 0x4f5   : > { %v1052_v34 = vsel %vm1050_vm0, %v1045_v31, -1e+09  ;;  %v1053_v36 = vsel %vm1051_vm3, %v1046_v32, -1e+09  ;;  %v1248_v31 = vsel %vm648_vm2, %v1236_v27, 0.0  ;;  %v1274_v58 = vmul.f32 %v2810_v56, %v2830_v23 }
 0x4f6   : > { %v1054_v37 = vsel %vm756_vm5, %v1052_v34, -inf  ;;  %v1057_v38 = vsel %vm756_vm5, %v1053_v36, -inf }
 0x4f7   : > { %1055 = vmax.xlane.f32.xlu1 %v1054_v37  ;;  %1058 = vmax.xlane.f32.xlu2 %v1057_v38 }
 0x4ff   : > { %770 = vadd.xlane.f32.xlu1 %v769_v45  ;;  %869 = vadd.xlane.f32.xlu2 %v868_v46 }
 0x507   : > { %773 = vadd.xlane.f32.xlu1 %v772_v50  ;;  %968 = vadd.xlane.f32.xlu2 %v967_v52 }
 0x50f   : > { %872 = vadd.xlane.f32.xlu1 %v871_v54  ;;  %1280 = vadd.xlane.f32.xlu2 %v1279_v8 }
 0x517   : > { %1246 = vadd.xlane.f32.xlu2 %v1245_v62 }
 0x51f   : > { %1286 = vadd.xlane.f32.xlu2 %v1285_v15 }
 0x527   : > { %1249 = vadd.xlane.f32.xlu2 %v1248_v31 }
 0x56a   : > { %v1059_v63 = vpop.xlane.xlu2 %1058  ;;  %v1056_v0 = vpop.xlane.xlu1 %1055 }
 0x56b   : > { %v1060_v9 = vsub.f32 %v1052_v34, %v1056_v0  ;;  %v1061_v13 = vsub.f32 %v1053_v36, %v1059_v63  ;;  %v2841_v34 = vpop.f32.mrf.mxu3  ;;  %v1237_v36 = vmul.f32 %v2820_v60, %v2830_v23  ;;  %v1105_v63 = vld [vmem:[%s3155_s6] sm:$0xff] }
 0x56c   : > { %1149 = vmatpush.msra.mxu2 %v1105_v63 }
 0x56d   : > { %v1062_v12 = vmul.f32 1.442695, %v1060_v9  ;;  %v1064_v17 = vmul.f32 1.442695, %v1061_v13  ;;  %v1251_v38 = vsel %vm648_vm2, %v1237_v36, 0.0 }
 0x56e   : > { %1252 = vadd.xlane.f32.xlu2 %v1251_v38  ;;  %1804 = vmatpush.msrb.mxu2 %v2611_v4 }
 0x56f   : > { %2400 = vpow2.f32 %v1062_v12 }
 0x570   : > { %1805 = vmatpush.msrb.mxu2 %v2606_v3 }
 0x572   : > { %v870_v22 = vpop.xlane.xlu2 %869  ;;  %v771_v11 = vpop.xlane.xlu1 %770 }
 0x573   : > { %2402 = vrcp.f32 %v771_v11 }
 0x574   : > { %2404 = vpow2.f32 %v1064_v17 }
 0x575   : > { %v2832_v24 = vpop.eup %2400 }
 0x576   : > { %v1066_v26 = vsel %vm756_vm5, %v2832_v24, 0.0 }
 0x577   : > { %1067 = vadd.xlane.f32.xlu1 %v1066_v26 }
 0x579   : > { %v2403_v28 = vpop.eup %2402 }
 0x57a   : > { %v969_v16 = vpop.xlane.xlu2 %968  ;;  %v774_v30 = vpop.xlane.xlu1 %773  ;;  %v777_v32 = vmul.f32 %v2403_v28, %v2391_v29 }
 0x57b   : > { %2406 = vrcp.f32 %v969_v16  ;;  %v2839_v33 = vpop.eup %2404 }
 0x57c   : > { %2408 = vrcp.f32 %v774_v30  ;;  %2264 = vmatmul.msk.f32.vlgmr.msra.gmra.mxu1 %vm756_vm5, %v777_v32  ;;  %v1069_v37 = vsel %vm756_vm5, %v2839_v33, 0.0 }
 0x57d   : > { %1096 = vmatpush.msra.mxu1 %v2666_v39  ;;  %2410 = vrcp.f32 %v870_v22  ;;  %v2855_v39 = vpop.f32.mrf.mxu3 }
 0x57e   : > { %1576 = vmatpush.msra.mxu0 %v2855_v39 }
 0x57f   : > { %1097 = vmatpush.msra.mxu1 %v2661_v35  ;;  %1070 = vadd.xlane.f32.xlu1 %v1069_v37  ;;  %v1242_v35 = vsel %vm648_vm2, %v1234_v41, 0.0 }
 0x580   : > { %1577 = vmatpush.msra.mxu0 %v2841_v34 }
 0x581   : > { %v2407_v40 = vpop.eup %2406 }
 0x582   : > { %v2409_v29 = vpop.eup %2408  ;;  %v975_v43 = vmul.f32 %v2407_v40, %v2397_v48  ;;  %v873_v46 = vpop.xlane.xlu1 %872  ;;  %v1272_v48 = vmul.f32 %v2810_v56, %v2815_v59 }
 0x583   : > { %v778_v45 = vmul.f32 %v2409_v29, %v2790_v20  ;;  %v2411_v47 = vpop.eup %2410  ;;  %2412 = vrcp.f32 %v873_v46 }
 0x584   : > { %2272 = vmatmul.msk.f32.vlgmr.msrb.gmra.mxu0 %vm756_vm5, %v975_v43  ;;  %v876_v20 = vmul.f32 %v2411_v47, %v2785_v42  ;;  %v1282_v52 = vsel %vm648_vm2, %v1272_v48, 0.0  ;;  %v1288_v42 = vsel %vm648_vm2, %v1274_v58, 0.0 }
 0x585   : > { %2265 = vmatmul.msk.f32.gmra.mxu1 %vm756_vm5, %v778_v45  ;;  %v2864_v50 = vpop.f32.mrf.mxu3 }
 0x587   : > { %1243 = vadd.xlane.f32.xlu1 %v1242_v35 }
 0x589   : > { %v2413_v54 = vpop.eup %2412 }
 0x58a   : > { %v877_v8 = vmul.f32 %v2413_v54, %v2799_v53 }
 0x58d   : > { %2268 = vmatmul.msk.f32.vlgmr.msrb.gmra.mxu1 %vm756_vm5, %v876_v20  ;;  %v2873_v61 = vpop.f32.mrf.mxu3 }
 0x58e   : > { %1388 = vmatpush.msrb.mxu1 %v2815_v59  ;;  %v1278_v62 = vmul.f32 %v2810_v56, %v2873_v61  ;;  %v1241_v16 = vmul.f32 %v2820_v60, %v2873_v61 }
 0x58f   : > { %1283 = vadd.xlane.f32.xlu1 %v1282_v52 }
 0x590   : > { %1389 = vmatpush.msrb.mxu1 %v2805_v7  ;;  %v1300_v59 = vsel %vm648_vm2, %v1278_v62, 0.0  ;;  %v1281_v7 = vpop.xlane.xlu2 %1280  ;;  %v1263_v30 = vsel %vm648_vm2, %v1241_v16, 0.0 }
 0x591   : > { %1301 = vadd.xlane.f32.xlu2 %v1300_v59  ;;  %1303 = vxpose.xlu0.b32.start [1/2] (short) (narrow) %v1281_v7, 8 }
 0x595   : > { %2269 = vmatmul.msk.f32.gmra.mxu1 %vm756_vm5, %v877_v8 }
 0x597   : > { %1289 = vadd.xlane.f32.xlu1 %v1288_v42 }
 0x598   : > { %v1247_v53 = vpop.xlane.xlu2 %1246 }
 0x5a0   : > { %v1287_v0 = vpop.xlane.xlu2 %1286 }
 0x5ba   : > { %1397 = vxpose.xlu2.b32.start [1/2] (short) (narrow) %v1287_v0, 8 }
 0x5ea   : > { %v1068_v9 = vpop.xlane.xlu1 %1067 }
 0x5eb   : > { %2414 = vrcp.f32 %v1068_v9 }
 0x5f1   : > { %v2415_v12 = vpop.eup %2414 }
 0x5f2   : > { %v1074_v13 = vmul.f32 %v2415_v12, %v2832_v24  ;;  %v1071_v14 = vpop.xlane.xlu1 %1070  ;;  %v1240_v24 = vmul.f32 %v2820_v60, %v2864_v50 }
 0x5f3   : > { %2416 = vrcp.f32 %v1071_v14 }
 0x5f4   : > { %2276 = vmatmul.msk.f32.vlgmr.msra.gmra.mxu1 %vm756_vm5, %v1074_v13 }
 0x5f5   : > { %1482 = vmatpush.msra.mxu1 %v2830_v23 }
 0x5f7   : > { %1483 = vmatpush.msra.mxu1 %v2825_v10  ;;  %v1277_v10 = vmul.f32 %v2810_v56, %v2864_v50 }
 0x5f9   : > { %v2417_v15 = vpop.eup %2416  ;;  %v802_v17 = vpop.f32.mrf.mxu1  ;;  %v1297_v23 = vsel %vm648_vm2, %v1277_v10, 0.0 }
 0x5fa   : > { %2278 = vmatmul.msk.f32.vlgmr.msra.gmra.mxu2 %vm648_vm2, %v802_v17  ;;  %v1244_v3 = vpop.xlane.xlu1 %1243  ;;  %v1075_v4 = vmul.f32 %v2417_v15, %v2839_v33  ;;  %1298 = vadd.xlane.f32.xlu1 %v1297_v23  ;;  %v1250_v33 = vpop.xlane.xlu2 %1249  ;;  %v1275_v23 = vmul.f32 %v2810_v56, %v2841_v34 }
 0x5fb   : > { %1827 = vmatpush.msra.mxu2 %v2621_v6 }
 0x5fc   : > { %2277 = vmatmul.msk.f32.gmra.mxu1 %vm756_vm5, %v1075_v4 }
 0x5fd   : > { %1828 = vmatpush.msra.mxu2 %v2616_v5  ;;  %v1260_v5 = vsel %vm648_vm2, %v1240_v24, 0.0  ;;  %v1291_v24 = vsel %vm648_vm2, %v1275_v23, 0.0  ;;  %v1759_v23 = vld [vmem:[%s3151_s2] sm:$0xff] }
 0x601   : > { %v1000_v28 = vpop.f32.mrf.mxu0 }
 0x602   : > { %v805_v22 = vpop.f32.mrf.mxu1  ;;  %v1284_v11 = vpop.xlane.xlu1 %1283  ;;  %1261 = vadd.xlane.f32.xlu1 %v1260_v5 }
 0x603   : > { %2279 = vmatmul.msk.f32.gmra.mxu2 %vm648_vm2, %v805_v22  ;;  %1304 = vxpose.xlu0.b32.end [2/2] (short) (narrow) %v1284_v11, 8  ;;  %v1253_v36 = vpop.xlane.xlu2 %1252 }
 0x60a   : > { %v901_v26 = vpop.f32.mrf.mxu1  ;;  %v1290_v6 = vpop.xlane.xlu1 %1289  ;;  %1264 = vadd.xlane.f32.xlu1 %v1263_v30 }
 0x60b   : > { %2280 = vmatmul.msk.f32.gmra.mxu2 %vm648_vm2, %v901_v26  ;;  %1398 = vxpose.xlu2.b32.end [2/2] (short) (narrow) %v1290_v6, 8  ;;  %v1302_v37 = vpop.xlane.xlu2 %1301  ;;  %v1239_v26 = vmul.f32 %v2820_v60, %v2855_v39 }
 0x60d   : > { %v1257_v6 = vsel %vm648_vm2, %v1239_v26, 0.0 }
 0x612   : > { %v904_v27 = vpop.f32.mrf.mxu1 }
 0x613   : > { %2281 = vmatmul.msk.f32.gmra.mxu2 %vm648_vm2, %v904_v27 }
 0x61b   : > { %2282 = vmatmul.msk.f32.gmra.mxu2 %vm648_vm2, %v1000_v28 }
 0x623   : > { %2283 = vmatmul.msk.f32.gmra.mxu2 %vm648_vm2, %v2803_v55 }
 0x66d   : > { %v1299_v7 = vpop.xlane.xlu1 %1298 }
 0x671   : > { %v1099_v31 = vpop.f32.mrf.mxu1 }
 0x672   : > { %2284 = vmatmul.msk.f32.gmra.mxu2 %vm648_vm2, %v1099_v31 }
 0x675   : > { %v1262_v63 = vpop.xlane.xlu1 %1261 }
 0x679   : > { %v1102_v32 = vpop.f32.mrf.mxu1 }
 0x67a   : > { %2285 = vmatmul.msk.f32.gmra.mxu2 %vm648_vm2, %v1102_v32 }
 0x682   : > { %2318 = vmatmul.msk.f32.vlgmr.msrb.gmra.mxu2 %vm756_vm5, %v1759_v23 }
 0x69c   : > { %v1413_v38 = vpop.trf.xlu2 }
 0x69d   : > { %v1429_v40 = vperm.slane %v1413_v38, 0 }
 0x69f   : > { %v1430_v41 = vadd.f32 %v1429_v40, %v1250_v33  ;;  %v1431_v29 = vadd.f32 %v1429_v40, %v1253_v36  ;;  %v1319_v55 = vpop.trf.xlu0 }
 0x6a0   : > { %v1335_v43 = vperm.slane %v1319_v55, 0 }
 0x6a1   : > { %vm1432_vm1 = vcmp.gt.f32.partialorder %v1430_v41, 0.0  ;;  %v1434_v45 = vmul.f32 0.2, %v1430_v41  ;;  %v1435_v4 = vmul.f32 0.2, %v1431_v29 }
 0x6a2   : > { %v1336_v35 = vadd.f32 %v1335_v43, %v1244_v3  ;;  %v1337_v46 = vadd.f32 %v1335_v43, %v1247_v53  ;;  %v1265_v53 = vpop.xlane.xlu1 %1264 }
 0x6a3   : > { %v1436_v47 = vsel %vm1432_vm1, %v1430_v41, %v1434_v45 }
 0x6a4   : > { %v1438_v48 = vsel %vm852_vm13, %v1436_v47, -1e+09  ;;  %vm1339_vm10 = vcmp.gt.f32.partialorder %v1337_v46, 0.0  ;;  %v1341_v20 = vmul.f32 0.2, %v1337_v46  ;;  %vm1338_vm12 = vcmp.gt.f32.partialorder %v1336_v35, 0.0 }
 0x6a5   : > { %v1440_v52 = vsel %vm756_vm5, %v1438_v48, -inf  ;;  %v1340_v54 = vmul.f32 0.2, %v1336_v35 }
 0x6a6   : > { %1441 = vmax.xlane.f32.xlu2 %v1440_v52  ;;  %v1343_v58 = vsel %vm1339_vm10, %v1337_v46, %v1341_v20 }
 0x6a7   : > { %v1345_v8 = vsel %vm753_vm9, %v1343_v58, -1e+09  ;;  %v1342_v42 = vsel %vm1338_vm12, %v1336_v35, %v1340_v54 }
 0x6a8   : > { %v1349_v62 = vsel %vm756_vm5, %v1345_v8, -inf  ;;  %v1344_v59 = vsel %vm752_vm7, %v1342_v42, -1e+09  ;;  %vm1433_vm7 = vcmp.gt.f32.partialorder %v1431_v29, 0.0 }
 0x6a9   : > { %1350 = vmax.xlane.f32.xlu0 %v1349_v62  ;;  %v1346_v49 = vsel %vm756_vm5, %v1344_v59, -inf  ;;  %v1437_v22 = vsel %vm1433_vm7, %v1431_v29, %v1435_v4 }
 0x6aa   : > { %1347 = vmax.xlane.f32.xlu1 %v1346_v49  ;;  %v1439_v11 = vsel %vm853_vm15, %v1437_v22, -1e+09  ;;  %v1276_v49 = vmul.f32 %v2810_v56, %v2855_v39 }
 0x6ab   : > { %v1443_v10 = vsel %vm756_vm5, %v1439_v11, -inf }
 0x6e4   : > { %1585 = vxpose.xlu1.b32.start [1/2] (short) (narrow) %v1299_v7, 8 }
 0x6ec   : > { %1586 = vxpose.xlu1.b32.end [2/2] (short) (narrow) %v1302_v37, 8 }
 0x719   : > { %v1442_v0 = vpop.xlane.xlu2 %1441 }
 0x71a   : > { %v1446_v25 = vsub.f32 %v1438_v48, %v1442_v0 }
 0x71c   : > { %v1448_v14 = vmul.f32 1.442695, %v1446_v25  ;;  %v1351_v16 = vpop.xlane.xlu0 %1350  ;;  %v1238_v25 = vmul.f32 %v2820_v60, %v2841_v34 }
 0x71d   : > { %v1348_v9 = vpop.xlane.xlu1 %1347  ;;  %v1353_v33 = vsub.f32 %v1345_v8, %v1351_v16 }
 0x71e   : > { %v1352_v12 = vsub.f32 %v1344_v59, %v1348_v9 }
 0x71f   : > { %v1356_v40 = vmul.f32 1.442695, %v1353_v33 }
 0x720   : > { %v1354_v13 = vmul.f32 1.442695, %v1352_v12 }
 0x722   : > { %2418 = vpow2.f32 %v1354_v13  ;;  %v1254_v13 = vsel %vm648_vm2, %v1238_v25, 0.0 }
 0x723   : > { %2420 = vpow2.f32 %v1448_v14 }
 0x724   : > { %2422 = vpow2.f32 %v1356_v40  ;;  %v2983_v40 = vpop.f32.mrf.mxu2 }
 0x728   : > { %v2419_v15 = vpop.eup %2418 }
 0x729   : > { %v1358_v18 = vsel %vm756_vm5, %v2419_v15, 0.0  ;;  %v2921_v17 = vpop.eup %2420 }
 0x72a   : > { %1359 = vadd.xlane.f32.xlu2 %v1358_v18  ;;  %v1452_v3 = vsel %vm756_vm5, %v2921_v17, 0.0  ;;  %v2423_v43 = vpop.eup %2422 }
 0x72b   : > { %v1361_v45 = vsel %vm756_vm5, %v2423_v43, 0.0 }
 0x732   : > { %1453 = vadd.xlane.f32.xlu2 %v1452_v3 }
 0x74c   : > { %1444 = vmax.xlane.f32.xlu1 %v1443_v10 }
 0x754   : > { %1292 = vadd.xlane.f32.xlu1 %v1291_v24  ;;  %v1760_v24 = vld [vmem:[%s3151_s2 + $0x8] sm:$0xff] }
 0x755   : > { %2321 = vmatmul.msk.f32.vlgmr.msra.gmra.mxu3 %vm756_vm5, %v1760_v24  ;;  %2319 = vmatmul.msk.f32.gmra.mxu2 %vm756_vm5, %v1760_v24 }
 0x75c   : > { %1258 = vadd.xlane.f32.xlu1 %v1257_v6 }
 0x75d   : > { %2320 = vmatmul.msk.f32.vlgmr.msra.gmra.mxu2 %vm756_vm5, %v1759_v23 }
 0x788   : > { %v1601_v5 = vpop.trf.xlu1 }
 0x789   : > { %v1617_v27 = vperm.slane %v1601_v5, 0 }
 0x78b   : > { %v1618_v28 = vadd.f32 %v1617_v27, %v1262_v63  ;;  %v1619_v57 = vadd.f32 %v1617_v27, %v1265_v53  ;;  %v1294_v53 = vsel %vm648_vm2, %v1276_v49, 0.0 }
 0x78d   : > { %vm1620_vm9 = vcmp.gt.f32.partialorder %v1618_v28, 0.0  ;;  %v1622_v30 = vmul.f32 0.2, %v1618_v28  ;;  %v1623_v32 = vmul.f32 0.2, %v1619_v57  ;;  %vm1621_vm13 = vcmp.gt.f32.partialorder %v1619_v57, 0.0 }
 0x78f   : > { %v1624_v31 = vsel %vm1620_vm9, %v1618_v28, %v1622_v30  ;;  %v1625_v38 = vsel %vm1621_vm13, %v1619_v57, %v1623_v32 }
 0x790   : > { %v1626_v36 = vsel %vm1050_vm0, %v1624_v31, -1e+09  ;;  %v1627_v41 = vsel %vm1051_vm3, %v1625_v38, -1e+09  ;;  %vm1950_vm0 = vcmask 261120  }
 0x791   : > { %v1628_v37 = vsel %vm756_vm5, %v1626_v36, -inf  ;;  %v1631_v29 = vsel %vm756_vm5, %v1627_v41, -inf }
 0x792   : > { %1629 = vmax.xlane.f32.xlu0 %v1628_v37 }
 0x79a   : > { %1632 = vmax.xlane.f32.xlu0 %v1631_v29 }
 0x79d   : > { %v1360_v55 = vpop.xlane.xlu2 %1359 }
 0x79e   : > { %2424 = vrcp.f32 %v1360_v55 }
 0x7a2   : > { %1362 = vadd.xlane.f32.xlu0 %v1361_v45 }
 0x7a4   : > { %v2425_v19 = vpop.eup %2424 }
 0x7a5   : > { %v1366_v35 = vmul.f32 %v2425_v19, %v2419_v15  ;;  %v1454_v63 = vpop.xlane.xlu2 %1453 }
 0x7a7   : > { %2298 = vmatmul.msk.f32.vlgmr.msrb.gmra.mxu1 %vm756_vm5, %v1366_v35 }
 0x7a8   : > { %1670 = vmatpush.msrb.mxu1 %v2873_v61 }
 0x7aa   : > { %1671 = vmatpush.msrb.mxu1 %v2864_v50 }
 0x7bf   : > { %v1445_v21 = vpop.xlane.xlu1 %1444 }
 0x7c0   : > { %v1447_v46 = vsub.f32 %v1439_v11, %v1445_v21 }
 0x7c2   : > { %v1450_v47 = vmul.f32 1.442695, %v1447_v46 }
 0x7c4   : > { %2426 = vpow2.f32 %v1450_v47 }
 0x7c7   : > { %v1293_v15 = vpop.xlane.xlu1 %1292 }
 0x7ca   : > { %v2427_v48 = vpop.eup %2426 }
 0x7cb   : > { %v1455_v20 = vsel %vm756_vm5, %v2427_v48, 0.0 }
 0x7cc   : > { %1456 = vadd.xlane.f32.xlu0 %v1455_v20  ;;  %v1859_v20 = vld [vmem:[%s3157_s8] sm:$0x3] }
 0x7cf   : > { %v1259_v5 = vpop.xlane.xlu1 %1258 }
 0x805   : > { %v1630_v52 = vpop.xlane.xlu0 %1629 }
 0x806   : > { %v1634_v54 = vsub.f32 %v1626_v36, %v1630_v52 }
 0x808   : > { %v1636_v58 = vmul.f32 1.442695, %v1634_v54 }
 0x80a   : > { %2428 = vpow2.f32 %v1636_v58 }
 0x80d   : > { %v1633_v8 = vpop.xlane.xlu0 %1632 }
 0x80e   : > { %v1635_v42 = vsub.f32 %v1627_v41, %v1633_v8  ;;  %v2985_v41 = vpop.f32.mrf.mxu2 }
 0x810   : > { %v2429_v62 = vpop.eup %2428  ;;  %v1638_v59 = vmul.f32 1.442695, %v1635_v42 }
 0x811   : > { %v1640_v61 = vsel %vm756_vm5, %v2429_v62, 0.0 }
 0x812   : > { %2430 = vpow2.f32 %v1638_v59  ;;  %1641 = vadd.xlane.f32.xlu2 %v1640_v61 }
 0x815   : > { %v1363_v50 = vpop.xlane.xlu0 %1362 }
 0x816   : > { %2432 = vrcp.f32 %v1363_v50 }
 0x817   : > { %2434 = vrcp.f32 %v1454_v63 }
 0x818   : > { %v2431_v7 = vpop.eup %2430 }
 0x819   : > { %v1643_v0 = vsel %vm756_vm5, %v2431_v7, 0.0 }
 0x81a   : > { %1295 = vadd.xlane.f32.xlu2 %v1294_v53  ;;  %1644 = vadd.xlane.f32.xlu0 %v1643_v0 }
 0x81c   : > { %v2433_v9 = vpop.eup %2432 }
 0x81d   : > { %v1367_v12 = vmul.f32 %v2433_v9, %v2423_v43  ;;  %v2435_v56 = vpop.eup %2434  ;;  %v2991_v43 = vpop.f32.mrf.mxu2 }
 0x81e   : > { %v1460_v39 = vmul.f32 %v2435_v56, %v2921_v17  ;;  %v1945_v56 = vld [vmem:[%s3159_s10 + $0x18] sm:$0xff] }
 0x81f   : > { %2299 = vmatmul.msk.f32.gmra.mxu1 %vm756_vm5, %v1367_v12  ;;  %v1833_v12 = vpop.f32.mrf.mxu3  ;;  %1987 = vmatpush.msrb.mxu3 %v1945_v56 }
 0x822   : > { %1255 = vadd.xlane.f32.xlu0 %v1254_v13  ;;  %v2306_v13 = vld [vmem:[%s3155_s6 + $0x8] sm:$0xff] }
 0x823   : > { %1725 = vmatpush.msrb.mxu0 %v2306_v13  ;;  %v2384_v13 = vld [vmem:[%s3160_s11] ss:$0 sm:$0xff] }
 0x824   : > { %v2987_v29 = vpop.f32.mrf.mxu1 }
 0x825   : > { %v2995_v51 = vpop.f32.mrf.mxu2 }
 0x827   : > { %2300 = vmatmul.msk.f32.vlgmr.msra.gmra.mxu1 %vm756_vm5, %v1460_v39  ;;  %v2382_v39 = vld [vmem:[%s3158_s9] ss:$0 sm:$0xff] }
 0x828   : > { %1781 = vmatpush.msra.mxu1 %v2601_v2  ;;  %v2451_v2 = vld [vmem:[%s2593_s19 + $0x30] sm:$0xff] }
 0x82a   : > { %1782 = vmatpush.msra.mxu1 %v2596_v1  ;;  %v2450_v1 = vld [vmem:[%s2593_s19 + $0x38] sm:$0xff]  ;;  %s556_s19 = scalar_lea.vmem %s3165_s16, %s2350_s21 }
 0x82d   : > { %v2999_v19 = vpop.f32.mrf.mxu2 }
 0x835   : > { %v3003_v21 = vpop.f32.mrf.mxu2 }
 0x83d   : > { %v3007_v47 = vpop.f32.mrf.mxu2 }
 0x83f   : > { %v1457_v14 = vpop.xlane.xlu0 %1456 }
 0x840   : > { %2436 = vrcp.f32 %v1457_v14 }
 0x843   : > { %1491 = vxpose.xlu2.b32.start [1/2] (short) (narrow) %v1293_v15, 8  ;;  %v1944_v15 = vld [vmem:[%s3159_s10 + $0x10] sm:$0xff] }
 0x844   : > { %1988 = vmatpush.msrb.mxu3 %v1944_v15 }
 0x845   : > { %v3013_v52 = vpop.f32.mrf.mxu2 }
 0x846   : > { %v2437_v60 = vpop.eup %2436 }
 0x847   : > { %v1461_v34 = vmul.f32 %v2437_v60, %v2427_v48 }
 0x849   : > { %2301 = vmatmul.msk.f32.gmra.mxu1 %vm756_vm5, %v1461_v34 }
 0x84d   : > { %v1807_v58 = vpop.f32.mrf.mxu2 }
 0x855   : > { %v1810_v49 = vpop.f32.mrf.mxu2 }
 0x85d   : > { %v1830_v9 = vpop.f32.mrf.mxu2 }
 0x885   : > { %v1642_v18 = vpop.xlane.xlu2 %1641 }
 0x886   : > { %2438 = vrcp.f32 %v1642_v18 }
 0x88c   : > { %v2439_v3 = vpop.eup %2438 }
 0x88d   : > { %v1648_v17 = vmul.f32 %v2439_v3, %v2429_v62  ;;  %v1296_v4 = vpop.xlane.xlu2 %1295  ;;  %v1645_v22 = vpop.xlane.xlu0 %1644  ;;  %v1943_v3 = vld [vmem:[%s3159_s10 + $0x8] sm:$0xff] }
 0x88e   : > { %2440 = vrcp.f32 %v1645_v22  ;;  %1492 = vxpose.xlu2.b32.end [2/2] (short) (narrow) %v1296_v4, 8  ;;  %1989 = vmatpush.msrb.mxu3 %v1943_v3 }
 0x88f   : > { %2304 = vmatmul.msk.f32.vlgmr.msrb.gmra.mxu1 %vm756_vm5, %v1648_v17  ;;  %v1942_v17 = vld [vmem:[%s3159_s10] sm:$0xff] }
 0x890   : > { %1850 = vmatpush.msrb.mxu1 %v2450_v1  ;;  %1990 = vmatpush.msrb.mxu3 %v1942_v17 }
 0x892   : > { %1851 = vmatpush.msrb.mxu1 %v2451_v2 }
 0x894   : > { %v2441_v11 = vpop.eup %2440 }
 0x895   : > { %v1649_v10 = vmul.f32 %v2441_v11, %v2431_v7  ;;  %v1256_v27 = vpop.xlane.xlu0 %1255 }
 0x897   : > { %2305 = vmatmul.msk.f32.gmra.mxu1 %vm756_vm5, %v1649_v10 }
 0x89c   : > { %v2989_v55 = vpop.f32.mrf.mxu1 }
 0x89f   : > { %2316 = vmatmul.msk.f32.vlgmr.msra.gmra.mxu1 %vm756_vm5, %v1759_v23 }
 0x8a4   : > { %v2993_v44 = vpop.f32.mrf.mxu1 }
 0x8a7   : > { %2317 = vmatmul.msk.f32.gmra.mxu1 %vm756_vm5, %v1760_v24 }
 0x8af   : > { %2322 = vmatmul.msk.f32.vlgmr.msrb.gmra.mxu1 %vm756_vm5, %v1759_v23 }
 0x8b7   : > { %2323 = vmatmul.msk.f32.gmra.mxu1 %vm756_vm5, %v1760_v24 }
 0x8c6   : > { %v2997_v45 = vpop.f32.mrf.mxu1 }
 0x90c   : > { %v3001_v35 = vpop.f32.mrf.mxu1 }
 0x914   : > { %v3005_v46 = vpop.f32.mrf.mxu1 }
 0x91c   : > { %v1784_v48 = vpop.f32.mrf.mxu1 }
 0x91f   : > { %v1507_v26 = vpop.trf.xlu2 }
 0x920   : > { %v1523_v6 = vperm.slane %v1507_v26, 0 }
 0x922   : > { %v1524_v28 = vadd.f32 %v1523_v6, %v1256_v27  ;;  %v1525_v57 = vadd.f32 %v1523_v6, %v1259_v5 }
 0x924   : > { %vm1526_vm14 = vcmp.gt.f32.partialorder %v1524_v28, 0.0  ;;  %v1528_v16 = vmul.f32 0.2, %v1524_v28  ;;  %vm1527_vm15 = vcmp.gt.f32.partialorder %v1525_v57, 0.0  ;;  %v1529_v30 = vmul.f32 0.2, %v1525_v57  ;;  %v1787_v54 = vpop.f32.mrf.mxu1 }
 0x926   : > { %v1530_v31 = vsel %vm1526_vm14, %v1524_v28, %v1528_v16  ;;  %v1531_v32 = vsel %vm1527_vm15, %v1525_v57, %v1529_v30 }
 0x927   : > { %v1532_v33 = vsel %vm951_vm11, %v1530_v31, -1e+09  ;;  %v1533_v36 = vsel %vm952_vm4, %v1531_v32, -1e+09  ;;  %vm1889_vm4 = vcmask 1041408   ;;  %vm1864_vm11 = vcmask 15360  }
 0x928   : > { %v1534_v37 = vsel %vm756_vm5, %v1532_v33, -inf  ;;  %v1537_v38 = vsel %vm756_vm5, %v1533_v36, -inf  ;;  %2324 = vmatpush.msk.msrb.mxu2 %vm1889_vm4, %v1859_v20 }
 0x929   : > { %1535 = vmax.xlane.f32.xlu0 %v1534_v37  ;;  %1538 = vmax.xlane.f32.xlu1 %v1537_v38 }
 0x92a   : > { %2325 = vmatmul.msk.f32.vlgmr.msrb.gmra.mxu2 %vm1864_vm11, %v1784_v48 }
 0x92c   : > { %v1853_v25 = vpop.f32.mrf.mxu1 }
 0x932   : > { %2326 = vmatmul.msk.f32.gmra.mxu2 %vm1864_vm11, %v1787_v54 }
 0x934   : > { %v1856_v23 = vpop.f32.mrf.mxu1 }
 0x93a   : > { %2327 = vmatmul.msk.f32.gmra.mxu2 %vm1864_vm11, %v1807_v58 }
 0x942   : > { %2328 = vmatmul.msk.f32.gmra.mxu2 %vm1864_vm11, %v1810_v49 }
 0x94a   : > { %2329 = vmatmul.msk.f32.gmra.mxu2 %vm1864_vm11, %v1830_v9 }
 0x952   : > { %2330 = vmatmul.msk.f32.gmra.mxu2 %vm1864_vm11, %v1833_v12 }
 0x95a   : > { %2331 = vmatmul.msk.f32.gmra.mxu2 %vm1864_vm11, %v1853_v25 }
 0x962   : > { %2332 = vmatmul.msk.f32.gmra.mxu2 %vm1864_vm11, %v1856_v23 }
 0x99c   : > { %v1536_v8 = vpop.xlane.xlu0 %1535  ;;  %v1539_v42 = vpop.xlane.xlu1 %1538 }
 0x99d   : > { %v1540_v62 = vsub.f32 %v1532_v33, %v1536_v8  ;;  %v1541_v59 = vsub.f32 %v1533_v36, %v1539_v42 }
 0x99f   : > { %v1542_v61 = vmul.f32 1.442695, %v1540_v62  ;;  %v1544_v50 = vmul.f32 1.442695, %v1541_v59 }
 0x9a1   : > { %2442 = vpow2.f32 %v1542_v61 }
 0x9a2   : > { %2444 = vpow2.f32 %v1544_v50 }
 0x9a7   : > { %v2443_v7 = vpop.eup %2442 }
 0x9a8   : > { %v2445_v63 = vpop.eup %2444  ;;  %v1546_v53 = vsel %vm756_vm5, %v2443_v7, 0.0 }
 0x9a9   : > { %1547 = vadd.xlane.f32.xlu0 %v1546_v53  ;;  %v1549_v0 = vsel %vm756_vm5, %v2445_v63, 0.0 }
 0x9aa   : > { %1550 = vadd.xlane.f32.xlu1 %v1549_v0 }
 0x9ad   : > { %v1910_v14 = vpop.f32.mrf.mxu2 }
 0x9ae   : > { %v1911_v60 = vadd.f32 %v2382_v39, %v1910_v14 }
 0x9b0   : > { %v1934_v18 = vmax.f32 %v1911_v60, 0.0 }
 0x9b2   : > { %2333 = vmatmul.msk.f32.vlgmr.msrb.gmra.mxu3 %vm1950_vm0, %v1934_v18 }
 0x9b5   : > { %v1913_v4 = vpop.f32.mrf.mxu2 }
 0x9b6   : > { %v1914_v1 = vadd.f32 %v2382_v39, %v1913_v4 }
 0x9b8   : > { %v1935_v10 = vmax.f32 %v1914_v1, 0.0 }
 0x9ba   : > { %2334 = vmatmul.msk.f32.gmra.mxu3 %vm1950_vm0, %v1935_v10 }
 0x9bd   : > { %v1916_v24 = vpop.f32.mrf.mxu2 }
 0x9be   : > { %v1917_v6 = vadd.f32 %v2382_v39, %v1916_v24 }
 0x9c0   : > { %v1936_v27 = vmax.f32 %v1917_v6, 0.0 }
 0x9c2   : > { %2335 = vmatmul.msk.f32.gmra.mxu3 %vm1950_vm0, %v1936_v27 }
 0x9c5   : > { %v1919_v28 = vpop.f32.mrf.mxu2 }
 0x9c6   : > { %v1920_v57 = vadd.f32 %v2382_v39, %v1919_v28 }
 0x9c8   : > { %v1937_v16 = vmax.f32 %v1920_v57, 0.0 }
 0x9ca   : > { %2336 = vmatmul.msk.f32.gmra.mxu3 %vm1950_vm0, %v1937_v16 }
 0x9cd   : > { %v1922_v30 = vpop.f32.mrf.mxu2 }
 0x9ce   : > { %v1923_v31 = vadd.f32 %v2382_v39, %v1922_v30 }
 0x9d0   : > { %v1938_v32 = vmax.f32 %v1923_v31, 0.0 }
 0x9d2   : > { %2337 = vmatmul.msk.f32.gmra.mxu3 %vm1950_vm0, %v1938_v32 }
 0x9d5   : > { %v1925_v33 = vpop.f32.mrf.mxu2 }
 0x9d6   : > { %v1926_v36 = vadd.f32 %v2382_v39, %v1925_v33 }
 0x9d8   : > { %v1939_v37 = vmax.f32 %v1926_v36, 0.0  ;;  %v2126_v36 = vld [vmem:[%s3163_s14 + $0x20] sm:$0xff] }
 0x9d9   : > { %2149 = vmatpush.msra.mxu1 %v2126_v36 }
 0x9da   : > { %2338 = vmatmul.msk.f32.gmra.mxu3 %vm1950_vm0, %v1939_v37  ;;  %v2125_v37 = vld [vmem:[%s3163_s14 + $0x18] sm:$0xff] }
 0x9db   : > { %2150 = vmatpush.msra.mxu1 %v2125_v37 }
 0x9dd   : > { %v1928_v38 = vpop.f32.mrf.mxu2 }
 0xa1c   : > { %v1548_v34 = vpop.xlane.xlu0 %1547 }
 0xa1d   : > { %2446 = vrcp.f32 %v1548_v34  ;;  %v1551_v22 = vpop.xlane.xlu1 %1550 }
 0xa1e   : > { %2448 = vrcp.f32 %v1551_v22 }
 0xa23   : > { %v2447_v2 = vpop.eup %2446 }
 0xa24   : > { %v1554_v11 = vmul.f32 %v2447_v2, %v2443_v7  ;;  %v2449_v26 = vpop.eup %2448 }
 0xa25   : > { %v1555_v5 = vmul.f32 %v2449_v26, %v2445_v63 }
 0xa26   : > { %2302 = vmatmul.msk.f32.vlgmr.msra.gmra.mxu0 %vm756_vm5, %v1554_v11 }
 0xa2e   : > { %2303 = vmatmul.msk.f32.gmra.mxu0 %vm756_vm5, %v1555_v5 }
 0xa35   : > { %v1992_v61 = vpop.f32.mrf.mxu3 }
 0xa36   : > { %2308 = vmatmul.msk.f32.vlgmr.msrb.gmra.mxu0 %vm648_vm2, %v2987_v29  ;;  %v1929_v29 = vadd.f32 %v2382_v39, %v1928_v38 }
 0xa38   : > { %v1940_v48 = vmax.f32 %v1929_v29, 0.0  ;;  %v2124_v29 = vld [vmem:[%s3163_s14 + $0x10] sm:$0xff] }
 0xa39   : > { %2151 = vmatpush.msra.mxu1 %v2124_v29 }
 0xa3a   : > { %2339 = vmatmul.msk.f32.gmra.mxu3 %vm1950_vm0, %v1940_v48 }
 0xa3d   : > { %v1995_v7 = vpop.f32.mrf.mxu3 }
 0xa3e   : > { %2309 = vmatmul.msk.f32.gmra.mxu0 %vm648_vm2, %v2989_v55  ;;  %v1996_v26 = vadd.f32 %v2384_v13, %v1995_v7 }
 0xa45   : > { %v1998_v25 = vpop.f32.mrf.mxu3 }
 0xa46   : > { %2310 = vmatmul.msk.f32.gmra.mxu0 %vm648_vm2, %v2993_v44  ;;  %v1931_v44 = vpop.f32.mrf.mxu2  ;;  %v1999_v6 = vadd.f32 %v2384_v13, %v1998_v25 }
 0xa47   : > { %v1932_v54 = vadd.f32 %v2382_v39, %v1931_v44  ;;  %v2381_v44 = vld [vmem:[%s3156_s7] ss:$0 sm:$0xff] }
 0xa48   : > { %v1152_v7 = vadd.f32 %v2381_v44, %v2983_v40 }
 0xa49   : > { %v1941_v58 = vmax.f32 %v1932_v54, 0.0 }
 0xa4a   : > { %v1175_v40 = vmax.f32 %v1152_v7, 0.0 }
 0xa4b   : > { %2340 = vmatmul.msk.f32.gmra.mxu3 %vm1950_vm0, %v1941_v58 }
 0xa4d   : > { %v2001_v56 = vpop.f32.mrf.mxu3 }
 0xa4e   : > { %2311 = vmatmul.msk.f32.gmra.mxu0 %vm648_vm2, %v2997_v45  ;;  %v2383_v45 = vld [vmem:[%s3156_s7 + $0x1] ss:$0 sm:$0xff]  ;;  %v2002_v39 = vadd.f32 %v2384_v13, %v2001_v56 }
 0xa55   : > { %v2004_v14 = vpop.f32.mrf.mxu3 }
 0xa56   : > { %v2005_v15 = vadd.f32 %v2384_v13, %v2004_v14 }
 0xa5d   : > { %v2007_v60 = vpop.f32.mrf.mxu3 }
 0xa5e   : > { %v2008_v34 = vadd.f32 %v2384_v13, %v2007_v60 }
 0xaa3   : > { %v1579_v55 = vpop.f32.mrf.mxu0 }
 0xaa4   : > { %2312 = vmatmul.msk.f32.gmra.mxu0 %vm648_vm2, %v1579_v55  ;;  %v2123_v55 = vld [vmem:[%s3163_s14 + $0x8] sm:$0xff] }
 0xaa5   : > { %2152 = vmatpush.msra.mxu1 %v2123_v55 }
 0xaab   : > { %v1582_v20 = vpop.f32.mrf.mxu0 }
 0xaac   : > { %2313 = vmatmul.msk.f32.gmra.mxu0 %vm648_vm2, %v1582_v20  ;;  %v2122_v20 = vld [vmem:[%s3163_s14] sm:$0xff] }
 0xaad   : > { %2153 = vmatpush.msra.mxu1 %v2122_v20 }
 0xab3   : > { %v1727_v8 = vpop.f32.mrf.mxu0 }
 0xab4   : > { %v1728_v42 = vadd.f32 %v2383_v45, %v1727_v8  ;;  %2314 = vmatmul.msk.f32.gmra.mxu0 %vm648_vm2, %v3001_v35  ;;  %v1155_v8 = vadd.f32 %v2381_v44, %v2985_v41 }
 0xab6   : > { %v1751_v62 = vmax.f32 %v1728_v42, 0.0 }
 0xab8   : > { %2024 = vrot.lane.b32.xlu0 %v1751_v62, %s2480_s28  ;;  %v1176_v62 = vmax.f32 %v1155_v8, 0.0 }
 0xabb   : > { %v1730_v59 = vpop.f32.mrf.mxu0 }
 0xabc   : > { %2315 = vmatmul.msk.f32.gmra.mxu0 %vm648_vm2, %v3005_v46  ;;  %v1731_v53 = vadd.f32 %v2383_v45, %v1730_v59  ;;  %v1993_v46 = vadd.f32 %v2384_v13, %v1992_v61  ;;  %vm2131_vm2 = vcmask 326656  }
 0xabd   : > { %v2010_v18 = vpop.f32.mrf.mxu3 }
 0xabe   : > { %v1752_v12 = vmax.f32 %v1731_v53, 0.0  ;;  %v2011_v3 = vadd.f32 %v2384_v13, %v2010_v18 }
 0xac3   : > { %v1733_v50 = vpop.f32.mrf.mxu0 }
 0xac4   : > { %v1734_v49 = vadd.f32 %v2383_v45, %v1733_v50  ;;  %v2101_v50 = vstv %s3098_s30 }
 0xac6   : > { %v1753_v63 = vmax.f32 %v1734_v49, 0.0 }
 0xac8   : > { %2028 = vrot.lane.b32.xlu1 %v1753_v63, %s2480_s28  ;;  %v1164_v63 = vadd.f32 %v2381_v44, %v2999_v19 }
 0xaca   : > { %v1179_v19 = vmax.f32 %v1164_v63, 0.0 }
 0xacb   : > { %v1736_v0 = vpop.f32.mrf.mxu0 }
 0xacc   : > { %v1737_v9 = vadd.f32 %v2383_v45, %v1736_v0 }
 0xace   : > { %v1754_v35 = vmax.f32 %v1737_v9, 0.0  ;;  %v2013_v23 = vpop.f32.mrf.mxu3  ;;  %v1158_v9 = vadd.f32 %v2381_v44, %v2991_v43 }
 0xacf   : > { %v2014_v24 = vadd.f32 %v2384_v13, %v2013_v23 }
 0xad0   : > { %2026 = vrot.lane.b32.xlu1 %v1752_v12, %s2480_s28  ;;  %2030 = vrot.lane.b32.xlu0 %v1754_v35, %s2480_s28  ;;  %v1170_v12 = vadd.f32 %v2381_v44, %v3007_v47  ;;  %v1177_v56 = vmax.f32 %v1158_v9, 0.0 }
 0xad8   : > { %2056 = vrot.lane.b32.xlu0 %v1993_v46, %s2481_s0 }
 0xae0   : > { %2062 = vrot.lane.b32.xlu0 %v2002_v39, %s2481_s0  ;;  %v1181_v39 = vmax.f32 %v1170_v12, 0.0 }
 0xae8   : > { %2064 = vrot.lane.b32.xlu0 %v2005_v15, %s2481_s0 }
 0xaf0   : > { %2066 = vrot.lane.b32.xlu0 %v2008_v34, %s2481_s0 }
 0xaf8   : > { %2068 = vrot.lane.b32.xlu0 %v2011_v3, %s2481_s0  ;;  %v2107_v3 = vstv %s3111_s17 }
 0xb00   : > { %2070 = vrot.lane.b32.xlu0 %v2014_v24, %s2481_s0 }
 0xb21   : > { %v1739_v17 = vpop.f32.mrf.mxu0 }
 0xb22   : > { %v1740_v4 = vadd.f32 %v2383_v45, %v1739_v17 }
 0xb24   : > { %v1755_v22 = vmax.f32 %v1740_v4, 0.0 }
 0xb26   : > { %2032 = vrot.lane.b32.xlu2 %v1755_v22, %s2480_s28 }
 0xb29   : > { %v1742_v1 = vpop.f32.mrf.mxu0 }
 0xb2a   : > { %v1743_v5 = vadd.f32 %v2383_v45, %v1742_v1  ;;  %v2025_v30 = vpop.permute.xlu0 %2024 }
 0xb2b   : > { %v2080_v14 = vsel %vm756_vm5, %v1175_v40, %v2025_v30 }
 0xb2c   : > { %v1756_v27 = vmax.f32 %v1743_v5, 0.0 }
 0xb31   : > { %v1745_v2 = vpop.f32.mrf.mxu0 }
 0xb32   : > { %v1746_v11 = vadd.f32 %v2383_v45, %v1745_v2  ;;  %v1167_v2 = vadd.f32 %v2381_v44, %v3003_v21 }
 0xb34   : > { %v1757_v10 = vmax.f32 %v1746_v11, 0.0  ;;  %v2113_v11 = vstv %s3116_s18  ;;  %v1180_v5 = vmax.f32 %v1167_v2, 0.0 }
 0xb36   : > { %2036 = vrot.lane.b32.xlu1 %v1757_v10, %s2480_s28 }
 0xb39   : > { %v1748_v28 = vpop.f32.mrf.mxu0 }
 0xb3a   : > { %v1749_v57 = vadd.f32 %v2383_v45, %v1748_v28  ;;  %v2029_v33 = vpop.permute.xlu1 %2028  ;;  %v1161_v45 = vadd.f32 %v2381_v44, %v2995_v51 }
 0xb3b   : > { %v2082_v47 = vsel %vm756_vm5, %v1177_v56, %v2029_v33 }
 0xb3c   : > { %v1758_v16 = vmax.f32 %v1749_v57, 0.0  ;;  %v1178_v42 = vmax.f32 %v1161_v45, 0.0 }
 0xb3e   : > { %2058 = vrot.lane.b32.xlu1 %v1996_v26, %s2481_s0 }
 0xb42   : > { %v2031_v31 = vpop.permute.xlu0 %2030  ;;  %v2027_v48 = vpop.permute.xlu1 %2026 }
 0xb43   : > { %v2083_v59 = vsel %vm756_vm5, %v1178_v42, %v2031_v31  ;;  %v2081_v51 = vsel %vm756_vm5, %v1176_v62, %v2027_v48  ;;  %v1173_v31 = vadd.f32 %v2381_v44, %v3013_v52  ;;  %v2385_v52 = vld [vmem:[%s3164_s15] ss:$0 sm:$0xff] }
 0xb46   : > { %2060 = vrot.lane.b32.xlu1 %v1999_v6, %s2481_s0  ;;  %s3101_s0 = sld [smem:[#allocation3]] }
 0xb4a   : > { %v2057_v32 = vpop.permute.xlu0 %2056 }
 0xb4b   : > { %v2088_v43 = vsel %vm1950_vm0, %v2080_v14, %v2057_v32  ;;  %v1182_v32 = vmax.f32 %v1173_v31, 0.0 }
 0xb4c   : > { %v2097_v0 = vstv %s3101_s0 }
 0xb4d   : > { %v2098_v22 = vmul.f32 %v2097_v0, %v2088_v43 }
 0xb4e   : > { %2034 = vrot.lane.b32.xlu1 %v1756_v27, %s2480_s28  ;;  %v2119_v27 = vstv %s3121_s20 }
 0xb52   : > { %v2063_v38 = vpop.permute.xlu0 %2062 }
 0xb53   : > { %v2091_v49 = vsel %vm1950_vm0, %v2083_v59, %v2063_v38 }
 0xb54   : > { %v2103_v35 = vmul.f32 %v2101_v50, %v2091_v49 }
 0xb56   : > { %2038 = vrot.lane.b32.xlu1 %v1758_v16, %s2480_s28 }
 0xb5a   : > { %v2065_v54 = vpop.permute.xlu0 %2064 }
 0xb62   : > { %v2067_v61 = vpop.permute.xlu0 %2066 }
 0xb6a   : > { %v2069_v34 = vpop.permute.xlu0 %2068 }
 0xb72   : > { %v2071_v36 = vpop.permute.xlu0 %2070 }
 0xb80   : > { %v2033_v13 = vpop.permute.xlu2 %2032 }
 0xb81   : > { %v2084_v15 = vsel %vm756_vm5, %v1179_v19, %v2033_v13 }
 0xb82   : > { %v2092_v17 = vsel %vm1950_vm0, %v2084_v15, %v2065_v54 }
 0xb83   : > { %v2108_v23 = vmul.f32 %v2107_v3, %v2092_v17 }
 0xba8   : > { %v2037_v58 = vpop.permute.xlu1 %2036 }
 0xba9   : > { %v2086_v60 = vsel %vm756_vm5, %v1181_v39, %v2037_v58 }
 0xbaa   : > { %v2094_v10 = vsel %vm1950_vm0, %v2086_v60, %v2069_v34 }
 0xbab   : > { %v2114_v26 = vmul.f32 %v2113_v11, %v2094_v10 }
 0xbb0   : > { %v2059_v53 = vpop.permute.xlu1 %2058 }
 0xbb1   : > { %v2089_v41 = vsel %vm1950_vm0, %v2081_v51, %v2059_v53 }
 0xbb2   : > { %v2099_v25 = vmul.f32 %v2097_v0, %v2089_v41 }
 0xbb4   : > { %v2105_v46 = vadd.f32 %v2103_v35, %v2099_v25 }
 0xbb8   : > { %v2061_v18 = vpop.permute.xlu1 %2060 }
 0xbb9   : > { %v2090_v4 = vsel %vm1950_vm0, %v2082_v47, %v2061_v18 }
 0xbba   : > { %v2102_v1 = vmul.f32 %v2101_v50, %v2090_v4 }
 0xbbc   : > { %v2104_v24 = vadd.f32 %v2102_v1, %v2098_v22 }
 0xbbe   : > { %v2110_v6 = vadd.f32 %v2108_v23, %v2104_v24 }
 0xbc0   : > { %v2116_v28 = vadd.f32 %v2114_v26, %v2110_v6  ;;  %v2035_v57 = vpop.permute.xlu1 %2034 }
 0xbc1   : > { %v2085_v16 = vsel %vm756_vm5, %v1180_v5, %v2035_v57 }
 0xbc2   : > { %v2120_v30 = vadd.f32 %v2119_v27, %v2116_v28  ;;  %v2093_v21 = vsel %vm1950_vm0, %v2085_v16, %v2067_v61 }
 0xbc3   : > { %v2109_v33 = vmul.f32 %v2107_v3, %v2093_v21 }
 0xbc4   : > { %2344 = vmatmul.msk.f32.vlgmr.msra.gmra.mxu1 %vm2131_vm2, %v2120_v30 }
 0xbc5   : > { %v2111_v48 = vadd.f32 %v2109_v33, %v2105_v46 }
 0xbc8   : > { %v2039_v37 = vpop.permute.xlu1 %2038 }
 0xbc9   : > { %v2087_v38 = vsel %vm756_vm5, %v1182_v32, %v2039_v37 }
 0xbca   : > { %v2095_v29 = vsel %vm1950_vm0, %v2087_v38, %v2071_v36 }
 0xbcb   : > { %v2115_v55 = vmul.f32 %v2113_v11, %v2095_v29 }
 0xbcd   : > { %v2117_v20 = vadd.f32 %v2115_v55, %v2111_v48 }
 0xbcf   : > { %v2121_v54 = vadd.f32 %v2119_v27, %v2117_v20 }
 0xbd1   : > { %2345 = vmatmul.msk.f32.gmra.mxu1 %vm2131_vm2, %v2121_v54 }
 0xc41   : > { %v2155_v44 = vpop.f32.mrf.mxu1 }
 0xc42   : > { %v2156_v45 = vadd.f32 %v2385_v52, %v2155_v44 }
 0xc44   : > { %2161 = vst.msk [vmem:[%s556_s19] sm:$0xff] %vm1864_vm11, %v2156_v45 }
 0xc4e   : > { %v2158_v58 = vpop.f32.mrf.mxu1 }
 0xc4f   : > { %v2159_v8 = vadd.f32 %v2385_v52, %v2158_v58 }
 0xc51   : > { %2162 = vst.msk [vmem:[%s556_s19 + $0x8] sm:$0xff] %vm1864_vm11, %v2159_v8 }
 0xc52 PF: > { %s28_s23 = sadd.s32 1, %s2477_s23  }
 0xc53   : > { %p25_p7 = scmp.ge.s32.totalorder %s28_s23, 4  }
 0xc55   :  { %27 = sbr.rel (!%p25_p7) target bundleno = 4 (0x4), region = 130 }
 0xc5a   :  { %2184 = vsyncpa [#allocation4], 1 }
 0xc5b   :  { %2186 = vsyncpa [#allocation4 + $0x1], 1 }

</bundles_post_ra>
